<compile_context>
chip_gen: v6e
topology: v6e:2x2x1
jax: 0.10.0
libtpu: 0.0.40
codegen_flags: <defaults>
</compile_context>

<pallas_src>
import jax
import jax.numpy as jnp
from jax.experimental import pallas as pl
from jax.experimental.pallas import tpu as pltpu

# ---------------- model hyper-parameters (small, consistent with __init__) ----
VOCAB = 50
D_MODEL = 32
NHEAD = 4
HEAD_DIM = D_MODEL // NHEAD
DIM_FF = 64
NUM_LAYERS = 2
MAX_LEN = 300
EPS = 1e-5
NEG_INF = -1e30  # stands in for -inf of _generate_square_subsequent_mask

# row indices inside the packed per-layer vector table `vecs` (L, 12, D)
_BQ, _BK, _BV, _BO, _CAC, _B2, _G1, _BE1, _G2, _BE2, _G3, _BE3 = range(12)


# ---------------- in-kernel helpers ------------------------------------------
def _layernorm(x, g, b):
    mu = jnp.mean(x, axis=-1, keepdims=True)
    xc = x - mu
    var = jnp.mean(xc * xc, axis=-1, keepdims=True)
    return xc * jax.lax.rsqrt(var + EPS) * g + b


# ---------------- Pallas kernel: full 2-layer decoder for one batch element ---
def fused_decoder_kernel(x_ref, pad_ref, wmat_ref, w2_ref, vec_ref, b1_ref, o_ref):
    x = x_ref[0]          # (S, D)  activations for this batch element
    pad = pad_ref[0]      # (1, S)  float key-padding row (additive, +1.0 at pads)
    S = x.shape[0]
    D = D_MODEL
    Dh = HEAD_DIM

    # causal additive mask built in-kernel (no O(S^2) HBM input)
    row = jax.lax.broadcasted_iota(jnp.int32, (S, S), 0)
    col = jax.lax.broadcasted_iota(jnp.int32, (S, S), 1)
    mask = jnp.where(col > row, NEG_INF, 0.0).astype(jnp.float32) + pad   # (S, S)

    scale = 1.0 / (Dh ** 0.5)

    for l in range(NUM_LAYERS):   # static unroll over the 2 layers (fully fused)
        def vrow(i, _l=l):
            return vec_ref[_l, i:i + 1, :]          # (1, D) static ref view load

        # ---- 1) masked multi-head self-attention -----------------------------
        # fused QKV: one MXU matmul for all heads / all of q,k,v
        qkv = jnp.dot(x, wmat_ref[l, :, 0:3 * D],
                      preferred_element_type=jnp.float32)                # (S, 3D)
        q = qkv[:, 0:D] + vrow(_BQ)
        k = qkv[:, D:2 * D] + vrow(_BK)
        v = qkv[:, 2 * D:3 * D] + vrow(_BV)

        ctx_heads = []
        for h in range(NHEAD):                        # static loop, tiny (8,8) tiles
            sl = slice(h * Dh, (h + 1) * Dh)
            qh, kh, vh = q[:, sl], k[:, sl], v[:, sl]
            s = jnp.dot(qh, kh.T, preferred_element_type=jnp.float32) * scale + mask
            m = jnp.max(s, axis=-1, keepdims=True)
            e = jnp.exp(s - m)
            p = e * pl.reciprocal(jnp.sum(e, axis=-1, keepdims=True), approx=True)
            ctx_heads.append(jnp.dot(p, vh, preferred_element_type=jnp.float32))
        ctx = jnp.concatenate(ctx_heads, axis=-1)                         # (S, D)

        attn = jnp.dot(ctx, wmat_ref[l, :, 3 * D:4 * D],
                       preferred_element_type=jnp.float32) + vrow(_BO)    # (S, D)
        x = _layernorm(x + attn, vrow(_G1), vrow(_BE1))

        # ---- 2) cross-attention vs zero memory == precomputed constant -------
        # softmax over identical keys is uniform; output = bv @ Wo + bo.
        x = _layernorm(x + vrow(_CAC), vrow(_G2), vrow(_BE2))

        # ---- 3) feed-forward (relu, post-norm) --------------------------------
        h1 = jnp.dot(x, wmat_ref[l, :, 4 * D:4 * D + DIM_FF],
                     preferred_element_type=jnp.float32) + b1_ref[l]
        h1 = jnp.maximum(h1, 0.0)
        ff = jnp.dot(h1, w2_ref[l], preferred_element_type=jnp.float32) + vrow(_B2)
        x = _layernorm(x + ff, vrow(_G3), vrow(_BE3))

    o_ref[0] = x


def pallas_fused_decoder(x, pad, wmat, w2, vecs, b1):
    """x: (B,S,D) f32, pad: (B,1,S) f32, rest: packed per-layer params."""
    B, S, D = x.shape
    packed = (wmat, w2, vecs, b1)

    def full_spec(a):
        nd = a.ndim
        return pl.BlockSpec(a.shape, lambda b: (0,) * nd)   # resident, fetched once

    in_specs = [
        pl.BlockSpec((1, S, D), lambda b: (b, 0, 0)),        # activations (per batch)
        pl.BlockSpec((1, 1, S), lambda b: (b, 0, 0)),        # key-padding row
    ] + [full_spec(a) for a in packed]

    return pl.pallas_call(
        fused_decoder_kernel,
        out_shape=jax.ShapeDtypeStruct((B, S, D), jnp.float32),
        grid=(B,),
        in_specs=in_specs,
        out_specs=pl.BlockSpec((1, S, D), lambda b: (b, 0, 0)),
        compiler_params=pltpu.CompilerParams(
            dimension_semantics=("parallel",),               # megacore on v7x
        ),
    )(x, pad, *packed)


# ---------------- deterministic parameter init --------------------------------
def init_params(key):
    def nrm(k, shape, scale=0.1):
        return (scale * jax.random.normal(k, shape)).astype(jnp.float32)

    keys = jax.random.split(key, 2 + NUM_LAYERS)
    params = {
        'embedding': nrm(keys[0], (VOCAB, D_MODEL), 1.0),     # nn.Embedding
        'pe': nrm(keys[1], (MAX_LEN, 1, D_MODEL), 0.1),       # AbsolutePositionalEncoding
        # output_linear exists in __init__ but is unused in forward.
        'layers': [],
    }
    for l in range(NUM_LAYERS):
        lk = jax.random.split(keys[2 + l], 22)
        layer = dict(
            # self-attention (weights stored pre-transposed: y = x @ W + b)
            sa_wq=nrm(lk[0], (D_MODEL, D_MODEL)),  sa_bq=nrm(lk[1], (1, D_MODEL), 0.02),
            sa_wk=nrm(lk[2], (D_MODEL, D_MODEL)),  sa_bk=nrm(lk[3], (1, D_MODEL), 0.02),
            sa_wv=nrm(lk[4], (D_MODEL, D_MODEL)),  sa_bv=nrm(lk[5], (1, D_MODEL), 0.02),
            sa_wo=nrm(lk[6], (D_MODEL, D_MODEL)),  sa_bo=nrm(lk[7], (1, D_MODEL), 0.02),
            # cross-attention (only bv/Wo/bo matter vs. zero memory, kept all for fidelity)
            ca_wq=nrm(lk[8], (D_MODEL, D_MODEL)),  ca_bq=nrm(lk[9], (1, D_MODEL), 0.02),
            ca_wk=nrm(lk[10], (D_MODEL, D_MODEL)), ca_bk=nrm(lk[11], (1, D_MODEL), 0.02),
            ca_wv=nrm(lk[12], (D_MODEL, D_MODEL)), ca_bv=nrm(lk[13], (1, D_MODEL), 0.02),
            ca_wo=nrm(lk[14], (D_MODEL, D_MODEL)), ca_bo=nrm(lk[15], (1, D_MODEL), 0.02),
            # feed-forward
            w1=nrm(lk[16], (D_MODEL, DIM_FF)),     b1=nrm(lk[17], (1, DIM_FF), 0.02),
            w2=nrm(lk[18], (DIM_FF, D_MODEL)),     b2=nrm(lk[19], (1, D_MODEL), 0.02),
            # layer norms
            g1=jnp.ones((1, D_MODEL), jnp.float32),  be1=jnp.zeros((1, D_MODEL), jnp.float32),
            g2=jnp.ones((1, D_MODEL), jnp.float32),  be2=jnp.zeros((1, D_MODEL), jnp.float32),
            g3=jnp.ones((1, D_MODEL), jnp.float32),  be3=jnp.zeros((1, D_MODEL), jnp.float32),
        )
        params['layers'].append(layer)
    return params


# ---------------- parameter packing (wrapper-side, tiny, reduces DMA count) ---
def _pack_layers(params):
    layers = params['layers']

    def stack(fn):
        return jnp.stack([fn(lp) for lp in layers], axis=0)

    # [Wq|Wk|Wv|Wo|W1] -> (L, D, 4D+FF).  Column layout: qkv 0:96, Wo 96:128
    # (fills lane-tile 0 exactly), W1 128:192 (lane-tile 1) -> no slice crosses
    # a 128-lane tile boundary inside the kernel.
    wmat = stack(lambda lp: jnp.concatenate(
        [lp['sa_wq'], lp['sa_wk'], lp['sa_wv'], lp['sa_wo'], lp['w1']], axis=1))
    w2 = stack(lambda lp: lp['w2'])                                   # (L, FF, D)
    b1 = stack(lambda lp: lp['b1'])                                   # (L, 1, FF)
    # zero-memory cross-attention collapses to the constant bv @ Wo + bo.
    vecs = stack(lambda lp: jnp.concatenate(
        [lp['sa_bq'], lp['sa_bk'], lp['sa_bv'], lp['sa_bo'],
         jnp.dot(lp['ca_bv'], lp['ca_wo']) + lp['ca_bo'],
         lp['b2'],
         lp['g1'], lp['be1'], lp['g2'], lp['be2'], lp['g3'], lp['be3']],
        axis=0))                                                      # (L, 12, D)
    return wmat, w2, vecs, b1


# ---------------- forward pass (glue in plain JAX, hot path in one Pallas call)
def transformer_decoder_forward(params, inputs, mask_len, padding_token):
    """inputs: (batch, seq) int32 token ids -> output (seq, batch, d_model)."""
    B, S = inputs.shape
    assert mask_len == S, "maskLen must match the sequence length"

    # TODO(synk): the embedding gather stays in plain JAX (a one-hot MXU matmul
    # in-kernel would change numerics; there is no clean tiny-gather Pallas path).
    emb = jnp.take(params['embedding'], inputs, axis=0)            # (B, S, D)
    # positional encoding added directly in batch-first layout (no transpose round trip)
    x = emb + params['pe'][:S, 0, :][None, :, :]                   # (B, S, D)

    # float key-padding row: +1.0 at padded keys (PyTorch additive float-mask quirk)
    pad = (inputs == padding_token).astype(jnp.float32).reshape(B, 1, S)

    wmat, w2, vecs, b1 = _pack_layers(params)
    out_bf = pallas_fused_decoder(x, pad, wmat, w2, vecs, b1)      # (B, S, D)

    # back to PyTorch's (seq, batch, d_model); output_linear is not applied.
    return jnp.transpose(out_bf, (1, 0, 2))


if __name__ == "__main__":
    key = jax.random.PRNGKey(0)
    pkey, dkey = jax.random.split(key)
    params = init_params(pkey)

    B, S = 2, 8
    padding_token = 0
    inputs = jax.random.randint(dkey, (B, S), 0, VOCAB, dtype=jnp.int32)

    out = transformer_decoder_forward(params, inputs, S, padding_token)
    out = jax.block_until_ready(out)

    assert out.shape == (S, B, D_MODEL), out.shape
    assert bool(jnp.all(jnp.isfinite(out)))
    print("KERNEL_OK")
</pallas_src>

<mosaic_0001>
module attributes {stable_mosaic.version = 11 : i64} {
  func.func @fused_decoder_kernel(%arg0: i32, %arg1: memref<1x8x32xf32, #tpu.memory_space<vmem>>, %arg2: memref<1x1x8xf32, #tpu.memory_space<vmem>>, %arg3: memref<2x32x192xf32, #tpu.memory_space<vmem>>, %arg4: memref<2x64x32xf32, #tpu.memory_space<vmem>>, %arg5: memref<2x12x32xf32, #tpu.memory_space<vmem>>, %arg6: memref<2x1x64xf32, #tpu.memory_space<vmem>>, %arg7: memref<1x8x32xf32, #tpu.memory_space<vmem>>) attributes {dimension_semantics = [#tpu.dimension_semantics<parallel>], iteration_bounds = array<i64: 2>, scalar_prefetch = 0 : i64, scratch_operands = 0 : i64, tpu.core_type = #tpu.core_type<tc>, window_params = [{transform_indices = @transform_0, window_bounds = array<i64: 1, 8, 32>}, {transform_indices = @transform_1, window_bounds = array<i64: 1, 1, 8>}, {pipeline_mode = #tpu.pipeline_mode<synchronous>, transform_indices = @transform_2, window_bounds = array<i64: 2, 32, 192>}, {pipeline_mode = #tpu.pipeline_mode<synchronous>, transform_indices = @transform_3, window_bounds = array<i64: 2, 64, 32>}, {pipeline_mode = #tpu.pipeline_mode<synchronous>, transform_indices = @transform_4, window_bounds = array<i64: 2, 12, 32>}, {pipeline_mode = #tpu.pipeline_mode<synchronous>, transform_indices = @transform_5, window_bounds = array<i64: 2, 1, 64>}, {transform_indices = @transform_6, window_bounds = array<i64: 1, 8, 32>}]} {
    %c0 = arith.constant 0 : index
    %c0_0 = arith.constant 0 : index
    %c0_1 = arith.constant 0 : index
    %0 = vector.load %arg1[%c0, %c0_0, %c0_1] : memref<1x8x32xf32, #tpu.memory_space<vmem>>, vector<1x8x32xf32>
    %1 = vector.shape_cast %0 : vector<1x8x32xf32> to vector<8x32xf32>
    %c0_2 = arith.constant 0 : index
    %c0_3 = arith.constant 0 : index
    %c0_4 = arith.constant 0 : index
    %2 = vector.load %arg2[%c0_2, %c0_3, %c0_4] : memref<1x1x8xf32, #tpu.memory_space<vmem>>, vector<1x1x8xf32>
    %3 = vector.shape_cast %2 : vector<1x1x8xf32> to vector<1x8xf32>
    %4 = tpu.iota {dimensions = array<i32: 0>} : vector<8x8xi32>
    %5 = tpu.iota {dimensions = array<i32: 1>} : vector<8x8xi32>
    %6 = arith.cmpi sgt, %5, %4 : vector<8x8xi32>
    %cst = arith.constant -1.000000e+30 : f32
    %cst_5 = arith.constant 0.000000e+00 : f32
    %7 = vector.broadcast %cst : f32 to vector<8x8xf32>
    %8 = vector.broadcast %cst_5 : f32 to vector<8x8xf32>
    %9 = arith.select %6, %7, %8 : vector<8x8xi1>, vector<8x8xf32>
    %10 = vector.broadcast %3 : vector<1x8xf32> to vector<8x8xf32>
    %11 = arith.addf %9, %10 : vector<8x8xf32>
    %c0_6 = arith.constant 0 : index
    %c0_7 = arith.constant 0 : index
    %c0_8 = arith.constant 0 : index
    %12 = vector.load %arg3[%c0_6, %c0_7, %c0_8] : memref<2x32x192xf32, #tpu.memory_space<vmem>>, vector<1x32x96xf32>
    %13 = vector.shape_cast %12 : vector<1x32x96xf32> to vector<32x96xf32>
    %cst_9 = arith.constant dense<0.000000e+00> : vector<8x96xf32>
    %14 = tpu.matmul %1, %13, %cst_9 {dimension_numbers = #tpu.dot_dimension_numbers<[1], [0], [0], [1], [0, 0, 1, 1], [], []>} : vector<8x32xf32>, vector<32x96xf32>, vector<8x96xf32> -> vector<8x96xf32>
    %15 = vector.extract_strided_slice %14 {offsets = [0, 0], sizes = [8, 32], strides = [1, 1]} : vector<8x96xf32> to vector<8x32xf32>
    %c0_10 = arith.constant 0 : index
    %c0_11 = arith.constant 0 : index
    %c0_12 = arith.constant 0 : index
    %16 = vector.load %arg5[%c0_10, %c0_11, %c0_12] : memref<2x12x32xf32, #tpu.memory_space<vmem>>, vector<1x1x32xf32>
    %17 = vector.shape_cast %16 : vector<1x1x32xf32> to vector<1x32xf32>
    %18 = vector.broadcast %17 : vector<1x32xf32> to vector<8x32xf32>
    %19 = arith.addf %15, %18 : vector<8x32xf32>
    %20 = vector.extract_strided_slice %14 {offsets = [0, 32], sizes = [8, 32], strides = [1, 1]} : vector<8x96xf32> to vector<8x32xf32>
    %c0_13 = arith.constant 0 : index
    %c1 = arith.constant 1 : index
    %c0_14 = arith.constant 0 : index
    %21 = vector.load %arg5[%c0_13, %c1, %c0_14] : memref<2x12x32xf32, #tpu.memory_space<vmem>>, vector<1x1x32xf32>
    %22 = vector.shape_cast %21 : vector<1x1x32xf32> to vector<1x32xf32>
    %23 = vector.broadcast %22 : vector<1x32xf32> to vector<8x32xf32>
    %24 = arith.addf %20, %23 : vector<8x32xf32>
    %25 = vector.extract_strided_slice %14 {offsets = [0, 64], sizes = [8, 32], strides = [1, 1]} : vector<8x96xf32> to vector<8x32xf32>
    %c0_15 = arith.constant 0 : index
    %c2 = arith.constant 2 : index
    %c0_16 = arith.constant 0 : index
    %26 = vector.load %arg5[%c0_15, %c2, %c0_16] : memref<2x12x32xf32, #tpu.memory_space<vmem>>, vector<1x1x32xf32>
    %27 = vector.shape_cast %26 : vector<1x1x32xf32> to vector<1x32xf32>
    %28 = vector.broadcast %27 : vector<1x32xf32> to vector<8x32xf32>
    %29 = arith.addf %25, %28 : vector<8x32xf32>
    %30 = vector.extract_strided_slice %19 {offsets = [0, 0], sizes = [8, 8], strides = [1, 1]} : vector<8x32xf32> to vector<8x8xf32>
    %31 = vector.extract_strided_slice %24 {offsets = [0, 0], sizes = [8, 8], strides = [1, 1]} : vector<8x32xf32> to vector<8x8xf32>
    %32 = vector.extract_strided_slice %29 {offsets = [0, 0], sizes = [8, 8], strides = [1, 1]} : vector<8x32xf32> to vector<8x8xf32>
    %33 = tpu.transpose %31, [1, 0] : vector<8x8xf32> -> vector<8x8xf32>
    %cst_17 = arith.constant dense<0.000000e+00> : vector<8x8xf32>
    %34 = tpu.matmul %30, %33, %cst_17 {dimension_numbers = #tpu.dot_dimension_numbers<[1], [0], [0], [1], [0, 0, 1, 1], [], []>} : vector<8x8xf32>, vector<8x8xf32>, vector<8x8xf32> -> vector<8x8xf32>
    %cst_18 = arith.constant 0.353553385 : f32
    %35 = vector.broadcast %cst_18 : f32 to vector<8x8xf32>
    %36 = arith.mulf %34, %35 : vector<8x8xf32>
    %37 = arith.addf %36, %11 : vector<8x8xf32>
    %cst_19 = arith.constant dense<0xFF800000> : vector<8xf32>
    %38 = vector.multi_reduction <maximumf>, %37, %cst_19 [1] : vector<8x8xf32> to vector<8xf32>
    %39 = vector.shape_cast %38 : vector<8xf32> to vector<8x1xf32>
    %40 = vector.broadcast %39 : vector<8x1xf32> to vector<8x8xf32>
    %41 = arith.subf %37, %40 : vector<8x8xf32>
    %42 = math.exp %41 : vector<8x8xf32>
    %cst_20 = arith.constant dense<0.000000e+00> : vector<8xf32>
    %43 = vector.multi_reduction <add>, %42, %cst_20 [1] : vector<8x8xf32> to vector<8xf32>
    %44 = vector.shape_cast %43 : vector<8xf32> to vector<8x1xf32>
    %45 = tpu.reciprocal %44 {approx = true} : vector<8x1xf32> -> vector<8x1xf32>
    %46 = vector.broadcast %45 : vector<8x1xf32> to vector<8x8xf32>
    %47 = arith.mulf %42, %46 : vector<8x8xf32>
    %cst_21 = arith.constant dense<0.000000e+00> : vector<8x8xf32>
    %48 = tpu.matmul %47, %32, %cst_21 {dimension_numbers = #tpu.dot_dimension_numbers<[1], [0], [0], [1], [0, 0, 1, 1], [], []>} : vector<8x8xf32>, vector<8x8xf32>, vector<8x8xf32> -> vector<8x8xf32>
    %49 = vector.extract_strided_slice %19 {offsets = [0, 8], sizes = [8, 8], strides = [1, 1]} : vector<8x32xf32> to vector<8x8xf32>
    %50 = vector.extract_strided_slice %24 {offsets = [0, 8], sizes = [8, 8], strides = [1, 1]} : vector<8x32xf32> to vector<8x8xf32>
    %51 = vector.extract_strided_slice %29 {offsets = [0, 8], sizes = [8, 8], strides = [1, 1]} : vector<8x32xf32> to vector<8x8xf32>
    %52 = tpu.transpose %50, [1, 0] : vector<8x8xf32> -> vector<8x8xf32>
    %cst_22 = arith.constant dense<0.000000e+00> : vector<8x8xf32>
    %53 = tpu.matmul %49, %52, %cst_22 {dimension_numbers = #tpu.dot_dimension_numbers<[1], [0], [0], [1], [0, 0, 1, 1], [], []>} : vector<8x8xf32>, vector<8x8xf32>, vector<8x8xf32> -> vector<8x8xf32>
    %cst_23 = arith.constant 0.353553385 : f32
    %54 = vector.broadcast %cst_23 : f32 to vector<8x8xf32>
    %55 = arith.mulf %53, %54 : vector<8x8xf32>
    %56 = arith.addf %55, %11 : vector<8x8xf32>
    %cst_24 = arith.constant dense<0xFF800000> : vector<8xf32>
    %57 = vector.multi_reduction <maximumf>, %56, %cst_24 [1] : vector<8x8xf32> to vector<8xf32>
    %58 = vector.shape_cast %57 : vector<8xf32> to vector<8x1xf32>
    %59 = vector.broadcast %58 : vector<8x1xf32> to vector<8x8xf32>
    %60 = arith.subf %56, %59 : vector<8x8xf32>
    %61 = math.exp %60 : vector<8x8xf32>
    %cst_25 = arith.constant dense<0.000000e+00> : vector<8xf32>
    %62 = vector.multi_reduction <add>, %61, %cst_25 [1] : vector<8x8xf32> to vector<8xf32>
    %63 = vector.shape_cast %62 : vector<8xf32> to vector<8x1xf32>
    %64 = tpu.reciprocal %63 {approx = true} : vector<8x1xf32> -> vector<8x1xf32>
    %65 = vector.broadcast %64 : vector<8x1xf32> to vector<8x8xf32>
    %66 = arith.mulf %61, %65 : vector<8x8xf32>
    %cst_26 = arith.constant dense<0.000000e+00> : vector<8x8xf32>
    %67 = tpu.matmul %66, %51, %cst_26 {dimension_numbers = #tpu.dot_dimension_numbers<[1], [0], [0], [1], [0, 0, 1, 1], [], []>} : vector<8x8xf32>, vector<8x8xf32>, vector<8x8xf32> -> vector<8x8xf32>
    %68 = vector.extract_strided_slice %19 {offsets = [0, 16], sizes = [8, 8], strides = [1, 1]} : vector<8x32xf32> to vector<8x8xf32>
    %69 = vector.extract_strided_slice %24 {offsets = [0, 16], sizes = [8, 8], strides = [1, 1]} : vector<8x32xf32> to vector<8x8xf32>
    %70 = vector.extract_strided_slice %29 {offsets = [0, 16], sizes = [8, 8], strides = [1, 1]} : vector<8x32xf32> to vector<8x8xf32>
    %71 = tpu.transpose %69, [1, 0] : vector<8x8xf32> -> vector<8x8xf32>
    %cst_27 = arith.constant dense<0.000000e+00> : vector<8x8xf32>
    %72 = tpu.matmul %68, %71, %cst_27 {dimension_numbers = #tpu.dot_dimension_numbers<[1], [0], [0], [1], [0, 0, 1, 1], [], []>} : vector<8x8xf32>, vector<8x8xf32>, vector<8x8xf32> -> vector<8x8xf32>
    %cst_28 = arith.constant 0.353553385 : f32
    %73 = vector.broadcast %cst_28 : f32 to vector<8x8xf32>
    %74 = arith.mulf %72, %73 : vector<8x8xf32>
    %75 = arith.addf %74, %11 : vector<8x8xf32>
    %cst_29 = arith.constant dense<0xFF800000> : vector<8xf32>
    %76 = vector.multi_reduction <maximumf>, %75, %cst_29 [1] : vector<8x8xf32> to vector<8xf32>
    %77 = vector.shape_cast %76 : vector<8xf32> to vector<8x1xf32>
    %78 = vector.broadcast %77 : vector<8x1xf32> to vector<8x8xf32>
    %79 = arith.subf %75, %78 : vector<8x8xf32>
    %80 = math.exp %79 : vector<8x8xf32>
    %cst_30 = arith.constant dense<0.000000e+00> : vector<8xf32>
    %81 = vector.multi_reduction <add>, %80, %cst_30 [1] : vector<8x8xf32> to vector<8xf32>
    %82 = vector.shape_cast %81 : vector<8xf32> to vector<8x1xf32>
    %83 = tpu.reciprocal %82 {approx = true} : vector<8x1xf32> -> vector<8x1xf32>
    %84 = vector.broadcast %83 : vector<8x1xf32> to vector<8x8xf32>
    %85 = arith.mulf %80, %84 : vector<8x8xf32>
    %cst_31 = arith.constant dense<0.000000e+00> : vector<8x8xf32>
    %86 = tpu.matmul %85, %70, %cst_31 {dimension_numbers = #tpu.dot_dimension_numbers<[1], [0], [0], [1], [0, 0, 1, 1], [], []>} : vector<8x8xf32>, vector<8x8xf32>, vector<8x8xf32> -> vector<8x8xf32>
    %87 = vector.extract_strided_slice %19 {offsets = [0, 24], sizes = [8, 8], strides = [1, 1]} : vector<8x32xf32> to vector<8x8xf32>
    %88 = vector.extract_strided_slice %24 {offsets = [0, 24], sizes = [8, 8], strides = [1, 1]} : vector<8x32xf32> to vector<8x8xf32>
    %89 = vector.extract_strided_slice %29 {offsets = [0, 24], sizes = [8, 8], strides = [1, 1]} : vector<8x32xf32> to vector<8x8xf32>
    %90 = tpu.transpose %88, [1, 0] : vector<8x8xf32> -> vector<8x8xf32>
    %cst_32 = arith.constant dense<0.000000e+00> : vector<8x8xf32>
    %91 = tpu.matmul %87, %90, %cst_32 {dimension_numbers = #tpu.dot_dimension_numbers<[1], [0], [0], [1], [0, 0, 1, 1], [], []>} : vector<8x8xf32>, vector<8x8xf32>, vector<8x8xf32> -> vector<8x8xf32>
    %cst_33 = arith.constant 0.353553385 : f32
    %92 = vector.broadcast %cst_33 : f32 to vector<8x8xf32>
    %93 = arith.mulf %91, %92 : vector<8x8xf32>
    %94 = arith.addf %93, %11 : vector<8x8xf32>
    %cst_34 = arith.constant dense<0xFF800000> : vector<8xf32>
    %95 = vector.multi_reduction <maximumf>, %94, %cst_34 [1] : vector<8x8xf32> to vector<8xf32>
    %96 = vector.shape_cast %95 : vector<8xf32> to vector<8x1xf32>
    %97 = vector.broadcast %96 : vector<8x1xf32> to vector<8x8xf32>
    %98 = arith.subf %94, %97 : vector<8x8xf32>
    %99 = math.exp %98 : vector<8x8xf32>
    %cst_35 = arith.constant dense<0.000000e+00> : vector<8xf32>
    %100 = vector.multi_reduction <add>, %99, %cst_35 [1] : vector<8x8xf32> to vector<8xf32>
    %101 = vector.shape_cast %100 : vector<8xf32> to vector<8x1xf32>
    %102 = tpu.reciprocal %101 {approx = true} : vector<8x1xf32> -> vector<8x1xf32>
    %103 = vector.broadcast %102 : vector<8x1xf32> to vector<8x8xf32>
    %104 = arith.mulf %99, %103 : vector<8x8xf32>
    %cst_36 = arith.constant dense<0.000000e+00> : vector<8x8xf32>
    %105 = tpu.matmul %104, %89, %cst_36 {dimension_numbers = #tpu.dot_dimension_numbers<[1], [0], [0], [1], [0, 0, 1, 1], [], []>} : vector<8x8xf32>, vector<8x8xf32>, vector<8x8xf32> -> vector<8x8xf32>
    %106 = tpu.concatenate %48, %67, %86, %105 in 1 : vector<8x8xf32>, vector<8x8xf32>, vector<8x8xf32>, vector<8x8xf32> -> vector<8x32xf32>
    %c0_37 = arith.constant 0 : index
    %c0_38 = arith.constant 0 : index
    %c96 = arith.constant 96 : index
    %107 = vector.load %arg3[%c0_37, %c0_38, %c96] : memref<2x32x192xf32, #tpu.memory_space<vmem>>, vector<1x32x32xf32>
    %108 = vector.shape_cast %107 : vector<1x32x32xf32> to vector<32x32xf32>
    %cst_39 = arith.constant dense<0.000000e+00> : vector<8x32xf32>
    %109 = tpu.matmul %106, %108, %cst_39 {dimension_numbers = #tpu.dot_dimension_numbers<[1], [0], [0], [1], [0, 0, 1, 1], [], []>} : vector<8x32xf32>, vector<32x32xf32>, vector<8x32xf32> -> vector<8x32xf32>
    %c0_40 = arith.constant 0 : index
    %c3 = arith.constant 3 : index
    %c0_41 = arith.constant 0 : index
    %110 = vector.load %arg5[%c0_40, %c3, %c0_41] : memref<2x12x32xf32, #tpu.memory_space<vmem>>, vector<1x1x32xf32>
    %111 = vector.shape_cast %110 : vector<1x1x32xf32> to vector<1x32xf32>
    %112 = vector.broadcast %111 : vector<1x32xf32> to vector<8x32xf32>
    %113 = arith.addf %109, %112 : vector<8x32xf32>
    %114 = arith.addf %1, %113 : vector<8x32xf32>
    %c0_42 = arith.constant 0 : index
    %c6 = arith.constant 6 : index
    %c0_43 = arith.constant 0 : index
    %115 = vector.load %arg5[%c0_42, %c6, %c0_43] : memref<2x12x32xf32, #tpu.memory_space<vmem>>, vector<1x1x32xf32>
    %116 = vector.shape_cast %115 : vector<1x1x32xf32> to vector<1x32xf32>
    %c0_44 = arith.constant 0 : index
    %c7 = arith.constant 7 : index
    %c0_45 = arith.constant 0 : index
    %117 = vector.load %arg5[%c0_44, %c7, %c0_45] : memref<2x12x32xf32, #tpu.memory_space<vmem>>, vector<1x1x32xf32>
    %118 = vector.shape_cast %117 : vector<1x1x32xf32> to vector<1x32xf32>
    %cst_46 = arith.constant dense<0.000000e+00> : vector<8xf32>
    %119 = vector.multi_reduction <add>, %114, %cst_46 [1] : vector<8x32xf32> to vector<8xf32>
    %120 = vector.shape_cast %119 : vector<8xf32> to vector<8x1xf32>
    %cst_47 = arith.constant 3.200000e+01 : f32
    %121 = vector.broadcast %cst_47 : f32 to vector<8x1xf32>
    %122 = arith.divf %120, %121 : vector<8x1xf32>
    %123 = vector.broadcast %122 : vector<8x1xf32> to vector<8x32xf32>
    %124 = arith.subf %114, %123 : vector<8x32xf32>
    %125 = arith.mulf %124, %124 : vector<8x32xf32>
    %cst_48 = arith.constant dense<0.000000e+00> : vector<8xf32>
    %126 = vector.multi_reduction <add>, %125, %cst_48 [1] : vector<8x32xf32> to vector<8xf32>
    %127 = vector.shape_cast %126 : vector<8xf32> to vector<8x1xf32>
    %cst_49 = arith.constant 3.200000e+01 : f32
    %128 = vector.broadcast %cst_49 : f32 to vector<8x1xf32>
    %129 = arith.divf %127, %128 : vector<8x1xf32>
    %cst_50 = arith.constant 9.99999974E-6 : f32
    %130 = vector.broadcast %cst_50 : f32 to vector<8x1xf32>
    %131 = arith.addf %129, %130 : vector<8x1xf32>
    %132 = math.rsqrt %131 : vector<8x1xf32>
    %133 = vector.broadcast %132 : vector<8x1xf32> to vector<8x32xf32>
    %134 = arith.mulf %124, %133 : vector<8x32xf32>
    %135 = vector.broadcast %116 : vector<1x32xf32> to vector<8x32xf32>
    %136 = arith.mulf %134, %135 : vector<8x32xf32>
    %137 = vector.broadcast %118 : vector<1x32xf32> to vector<8x32xf32>
    %138 = arith.addf %136, %137 : vector<8x32xf32>
    %c0_51 = arith.constant 0 : index
    %c4 = arith.constant 4 : index
    %c0_52 = arith.constant 0 : index
    %139 = vector.load %arg5[%c0_51, %c4, %c0_52] : memref<2x12x32xf32, #tpu.memory_space<vmem>>, vector<1x1x32xf32>
    %140 = vector.shape_cast %139 : vector<1x1x32xf32> to vector<1x32xf32>
    %141 = vector.broadcast %140 : vector<1x32xf32> to vector<8x32xf32>
    %142 = arith.addf %138, %141 : vector<8x32xf32>
    %c0_53 = arith.constant 0 : index
    %c8 = arith.constant 8 : index
    %c0_54 = arith.constant 0 : index
    %143 = vector.load %arg5[%c0_53, %c8, %c0_54] : memref<2x12x32xf32, #tpu.memory_space<vmem>>, vector<1x1x32xf32>
    %144 = vector.shape_cast %143 : vector<1x1x32xf32> to vector<1x32xf32>
    %c0_55 = arith.constant 0 : index
    %c9 = arith.constant 9 : index
    %c0_56 = arith.constant 0 : index
    %145 = vector.load %arg5[%c0_55, %c9, %c0_56] : memref<2x12x32xf32, #tpu.memory_space<vmem>>, vector<1x1x32xf32>
    %146 = vector.shape_cast %145 : vector<1x1x32xf32> to vector<1x32xf32>
    %cst_57 = arith.constant dense<0.000000e+00> : vector<8xf32>
    %147 = vector.multi_reduction <add>, %142, %cst_57 [1] : vector<8x32xf32> to vector<8xf32>
    %148 = vector.shape_cast %147 : vector<8xf32> to vector<8x1xf32>
    %cst_58 = arith.constant 3.200000e+01 : f32
    %149 = vector.broadcast %cst_58 : f32 to vector<8x1xf32>
    %150 = arith.divf %148, %149 : vector<8x1xf32>
    %151 = vector.broadcast %150 : vector<8x1xf32> to vector<8x32xf32>
    %152 = arith.subf %142, %151 : vector<8x32xf32>
    %153 = arith.mulf %152, %152 : vector<8x32xf32>
    %cst_59 = arith.constant dense<0.000000e+00> : vector<8xf32>
    %154 = vector.multi_reduction <add>, %153, %cst_59 [1] : vector<8x32xf32> to vector<8xf32>
    %155 = vector.shape_cast %154 : vector<8xf32> to vector<8x1xf32>
    %cst_60 = arith.constant 3.200000e+01 : f32
    %156 = vector.broadcast %cst_60 : f32 to vector<8x1xf32>
    %157 = arith.divf %155, %156 : vector<8x1xf32>
    %cst_61 = arith.constant 9.99999974E-6 : f32
    %158 = vector.broadcast %cst_61 : f32 to vector<8x1xf32>
    %159 = arith.addf %157, %158 : vector<8x1xf32>
    %160 = math.rsqrt %159 : vector<8x1xf32>
    %161 = vector.broadcast %160 : vector<8x1xf32> to vector<8x32xf32>
    %162 = arith.mulf %152, %161 : vector<8x32xf32>
    %163 = vector.broadcast %144 : vector<1x32xf32> to vector<8x32xf32>
    %164 = arith.mulf %162, %163 : vector<8x32xf32>
    %165 = vector.broadcast %146 : vector<1x32xf32> to vector<8x32xf32>
    %166 = arith.addf %164, %165 : vector<8x32xf32>
    %c0_62 = arith.constant 0 : index
    %c0_63 = arith.constant 0 : index
    %c128 = arith.constant 128 : index
    %167 = vector.load %arg3[%c0_62, %c0_63, %c128] : memref<2x32x192xf32, #tpu.memory_space<vmem>>, vector<1x32x64xf32>
    %168 = vector.shape_cast %167 : vector<1x32x64xf32> to vector<32x64xf32>
    %cst_64 = arith.constant dense<0.000000e+00> : vector<8x64xf32>
    %169 = tpu.matmul %166, %168, %cst_64 {dimension_numbers = #tpu.dot_dimension_numbers<[1], [0], [0], [1], [0, 0, 1, 1], [], []>} : vector<8x32xf32>, vector<32x64xf32>, vector<8x64xf32> -> vector<8x64xf32>
    %c0_65 = arith.constant 0 : index
    %c0_66 = arith.constant 0 : index
    %c0_67 = arith.constant 0 : index
    %170 = vector.load %arg6[%c0_65, %c0_66, %c0_67] : memref<2x1x64xf32, #tpu.memory_space<vmem>>, vector<1x1x64xf32>
    %171 = vector.shape_cast %170 : vector<1x1x64xf32> to vector<1x64xf32>
    %172 = vector.broadcast %171 : vector<1x64xf32> to vector<8x64xf32>
    %173 = arith.addf %169, %172 : vector<8x64xf32>
    %cst_68 = arith.constant 0.000000e+00 : f32
    %174 = vector.broadcast %cst_68 : f32 to vector<8x64xf32>
    %175 = arith.maximumf %173, %174 : vector<8x64xf32>
    %c0_69 = arith.constant 0 : index
    %c0_70 = arith.constant 0 : index
    %c0_71 = arith.constant 0 : index
    %176 = vector.load %arg4[%c0_69, %c0_70, %c0_71] : memref<2x64x32xf32, #tpu.memory_space<vmem>>, vector<1x64x32xf32>
    %177 = vector.shape_cast %176 : vector<1x64x32xf32> to vector<64x32xf32>
    %cst_72 = arith.constant dense<0.000000e+00> : vector<8x32xf32>
    %178 = tpu.matmul %175, %177, %cst_72 {dimension_numbers = #tpu.dot_dimension_numbers<[1], [0], [0], [1], [0, 0, 1, 1], [], []>} : vector<8x64xf32>, vector<64x32xf32>, vector<8x32xf32> -> vector<8x32xf32>
    %c0_73 = arith.constant 0 : index
    %c5 = arith.constant 5 : index
    %c0_74 = arith.constant 0 : index
    %179 = vector.load %arg5[%c0_73, %c5, %c0_74] : memref<2x12x32xf32, #tpu.memory_space<vmem>>, vector<1x1x32xf32>
    %180 = vector.shape_cast %179 : vector<1x1x32xf32> to vector<1x32xf32>
    %181 = vector.broadcast %180 : vector<1x32xf32> to vector<8x32xf32>
    %182 = arith.addf %178, %181 : vector<8x32xf32>
    %183 = arith.addf %166, %182 : vector<8x32xf32>
    %c0_75 = arith.constant 0 : index
    %c10 = arith.constant 10 : index
    %c0_76 = arith.constant 0 : index
    %184 = vector.load %arg5[%c0_75, %c10, %c0_76] : memref<2x12x32xf32, #tpu.memory_space<vmem>>, vector<1x1x32xf32>
    %185 = vector.shape_cast %184 : vector<1x1x32xf32> to vector<1x32xf32>
    %c0_77 = arith.constant 0 : index
    %c11 = arith.constant 11 : index
    %c0_78 = arith.constant 0 : index
    %186 = vector.load %arg5[%c0_77, %c11, %c0_78] : memref<2x12x32xf32, #tpu.memory_space<vmem>>, vector<1x1x32xf32>
    %187 = vector.shape_cast %186 : vector<1x1x32xf32> to vector<1x32xf32>
    %cst_79 = arith.constant dense<0.000000e+00> : vector<8xf32>
    %188 = vector.multi_reduction <add>, %183, %cst_79 [1] : vector<8x32xf32> to vector<8xf32>
    %189 = vector.shape_cast %188 : vector<8xf32> to vector<8x1xf32>
    %cst_80 = arith.constant 3.200000e+01 : f32
    %190 = vector.broadcast %cst_80 : f32 to vector<8x1xf32>
    %191 = arith.divf %189, %190 : vector<8x1xf32>
    %192 = vector.broadcast %191 : vector<8x1xf32> to vector<8x32xf32>
    %193 = arith.subf %183, %192 : vector<8x32xf32>
    %194 = arith.mulf %193, %193 : vector<8x32xf32>
    %cst_81 = arith.constant dense<0.000000e+00> : vector<8xf32>
    %195 = vector.multi_reduction <add>, %194, %cst_81 [1] : vector<8x32xf32> to vector<8xf32>
    %196 = vector.shape_cast %195 : vector<8xf32> to vector<8x1xf32>
    %cst_82 = arith.constant 3.200000e+01 : f32
    %197 = vector.broadcast %cst_82 : f32 to vector<8x1xf32>
    %198 = arith.divf %196, %197 : vector<8x1xf32>
    %cst_83 = arith.constant 9.99999974E-6 : f32
    %199 = vector.broadcast %cst_83 : f32 to vector<8x1xf32>
    %200 = arith.addf %198, %199 : vector<8x1xf32>
    %201 = math.rsqrt %200 : vector<8x1xf32>
    %202 = vector.broadcast %201 : vector<8x1xf32> to vector<8x32xf32>
    %203 = arith.mulf %193, %202 : vector<8x32xf32>
    %204 = vector.broadcast %185 : vector<1x32xf32> to vector<8x32xf32>
    %205 = arith.mulf %203, %204 : vector<8x32xf32>
    %206 = vector.broadcast %187 : vector<1x32xf32> to vector<8x32xf32>
    %207 = arith.addf %205, %206 : vector<8x32xf32>
    %c1_84 = arith.constant 1 : index
    %c0_85 = arith.constant 0 : index
    %c0_86 = arith.constant 0 : index
    %208 = vector.load %arg3[%c1_84, %c0_85, %c0_86] : memref<2x32x192xf32, #tpu.memory_space<vmem>>, vector<1x32x96xf32>
    %209 = vector.shape_cast %208 : vector<1x32x96xf32> to vector<32x96xf32>
    %cst_87 = arith.constant dense<0.000000e+00> : vector<8x96xf32>
    %210 = tpu.matmul %207, %209, %cst_87 {dimension_numbers = #tpu.dot_dimension_numbers<[1], [0], [0], [1], [0, 0, 1, 1], [], []>} : vector<8x32xf32>, vector<32x96xf32>, vector<8x96xf32> -> vector<8x96xf32>
    %211 = vector.extract_strided_slice %210 {offsets = [0, 0], sizes = [8, 32], strides = [1, 1]} : vector<8x96xf32> to vector<8x32xf32>
    %c1_88 = arith.constant 1 : index
    %c0_89 = arith.constant 0 : index
    %c0_90 = arith.constant 0 : index
    %212 = vector.load %arg5[%c1_88, %c0_89, %c0_90] : memref<2x12x32xf32, #tpu.memory_space<vmem>>, vector<1x1x32xf32>
    %213 = vector.shape_cast %212 : vector<1x1x32xf32> to vector<1x32xf32>
    %214 = vector.broadcast %213 : vector<1x32xf32> to vector<8x32xf32>
    %215 = arith.addf %211, %214 : vector<8x32xf32>
    %216 = vector.extract_strided_slice %210 {offsets = [0, 32], sizes = [8, 32], strides = [1, 1]} : vector<8x96xf32> to vector<8x32xf32>
    %c1_91 = arith.constant 1 : index
    %c1_92 = arith.constant 1 : index
    %c0_93 = arith.constant 0 : index
    %217 = vector.load %arg5[%c1_91, %c1_92, %c0_93] : memref<2x12x32xf32, #tpu.memory_space<vmem>>, vector<1x1x32xf32>
    %218 = vector.shape_cast %217 : vector<1x1x32xf32> to vector<1x32xf32>
    %219 = vector.broadcast %218 : vector<1x32xf32> to vector<8x32xf32>
    %220 = arith.addf %216, %219 : vector<8x32xf32>
    %221 = vector.extract_strided_slice %210 {offsets = [0, 64], sizes = [8, 32], strides = [1, 1]} : vector<8x96xf32> to vector<8x32xf32>
    %c1_94 = arith.constant 1 : index
    %c2_95 = arith.constant 2 : index
    %c0_96 = arith.constant 0 : index
    %222 = vector.load %arg5[%c1_94, %c2_95, %c0_96] : memref<2x12x32xf32, #tpu.memory_space<vmem>>, vector<1x1x32xf32>
    %223 = vector.shape_cast %222 : vector<1x1x32xf32> to vector<1x32xf32>
    %224 = vector.broadcast %223 : vector<1x32xf32> to vector<8x32xf32>
    %225 = arith.addf %221, %224 : vector<8x32xf32>
    %226 = vector.extract_strided_slice %215 {offsets = [0, 0], sizes = [8, 8], strides = [1, 1]} : vector<8x32xf32> to vector<8x8xf32>
    %227 = vector.extract_strided_slice %220 {offsets = [0, 0], sizes = [8, 8], strides = [1, 1]} : vector<8x32xf32> to vector<8x8xf32>
    %228 = vector.extract_strided_slice %225 {offsets = [0, 0], sizes = [8, 8], strides = [1, 1]} : vector<8x32xf32> to vector<8x8xf32>
    %229 = tpu.transpose %227, [1, 0] : vector<8x8xf32> -> vector<8x8xf32>
    %cst_97 = arith.constant dense<0.000000e+00> : vector<8x8xf32>
    %230 = tpu.matmul %226, %229, %cst_97 {dimension_numbers = #tpu.dot_dimension_numbers<[1], [0], [0], [1], [0, 0, 1, 1], [], []>} : vector<8x8xf32>, vector<8x8xf32>, vector<8x8xf32> -> vector<8x8xf32>
    %cst_98 = arith.constant 0.353553385 : f32
    %231 = vector.broadcast %cst_98 : f32 to vector<8x8xf32>
    %232 = arith.mulf %230, %231 : vector<8x8xf32>
    %233 = arith.addf %232, %11 : vector<8x8xf32>
    %cst_99 = arith.constant dense<0xFF800000> : vector<8xf32>
    %234 = vector.multi_reduction <maximumf>, %233, %cst_99 [1] : vector<8x8xf32> to vector<8xf32>
    %235 = vector.shape_cast %234 : vector<8xf32> to vector<8x1xf32>
    %236 = vector.broadcast %235 : vector<8x1xf32> to vector<8x8xf32>
    %237 = arith.subf %233, %236 : vector<8x8xf32>
    %238 = math.exp %237 : vector<8x8xf32>
    %cst_100 = arith.constant dense<0.000000e+00> : vector<8xf32>
    %239 = vector.multi_reduction <add>, %238, %cst_100 [1] : vector<8x8xf32> to vector<8xf32>
    %240 = vector.shape_cast %239 : vector<8xf32> to vector<8x1xf32>
    %241 = tpu.reciprocal %240 {approx = true} : vector<8x1xf32> -> vector<8x1xf32>
    %242 = vector.broadcast %241 : vector<8x1xf32> to vector<8x8xf32>
    %243 = arith.mulf %238, %242 : vector<8x8xf32>
    %cst_101 = arith.constant dense<0.000000e+00> : vector<8x8xf32>
    %244 = tpu.matmul %243, %228, %cst_101 {dimension_numbers = #tpu.dot_dimension_numbers<[1], [0], [0], [1], [0, 0, 1, 1], [], []>} : vector<8x8xf32>, vector<8x8xf32>, vector<8x8xf32> -> vector<8x8xf32>
    %245 = vector.extract_strided_slice %215 {offsets = [0, 8], sizes = [8, 8], strides = [1, 1]} : vector<8x32xf32> to vector<8x8xf32>
    %246 = vector.extract_strided_slice %220 {offsets = [0, 8], sizes = [8, 8], strides = [1, 1]} : vector<8x32xf32> to vector<8x8xf32>
    %247 = vector.extract_strided_slice %225 {offsets = [0, 8], sizes = [8, 8], strides = [1, 1]} : vector<8x32xf32> to vector<8x8xf32>
    %248 = tpu.transpose %246, [1, 0] : vector<8x8xf32> -> vector<8x8xf32>
    %cst_102 = arith.constant dense<0.000000e+00> : vector<8x8xf32>
    %249 = tpu.matmul %245, %248, %cst_102 {dimension_numbers = #tpu.dot_dimension_numbers<[1], [0], [0], [1], [0, 0, 1, 1], [], []>} : vector<8x8xf32>, vector<8x8xf32>, vector<8x8xf32> -> vector<8x8xf32>
    %cst_103 = arith.constant 0.353553385 : f32
    %250 = vector.broadcast %cst_103 : f32 to vector<8x8xf32>
    %251 = arith.mulf %249, %250 : vector<8x8xf32>
    %252 = arith.addf %251, %11 : vector<8x8xf32>
    %cst_104 = arith.constant dense<0xFF800000> : vector<8xf32>
    %253 = vector.multi_reduction <maximumf>, %252, %cst_104 [1] : vector<8x8xf32> to vector<8xf32>
    %254 = vector.shape_cast %253 : vector<8xf32> to vector<8x1xf32>
    %255 = vector.broadcast %254 : vector<8x1xf32> to vector<8x8xf32>
    %256 = arith.subf %252, %255 : vector<8x8xf32>
    %257 = math.exp %256 : vector<8x8xf32>
    %cst_105 = arith.constant dense<0.000000e+00> : vector<8xf32>
    %258 = vector.multi_reduction <add>, %257, %cst_105 [1] : vector<8x8xf32> to vector<8xf32>
    %259 = vector.shape_cast %258 : vector<8xf32> to vector<8x1xf32>
    %260 = tpu.reciprocal %259 {approx = true} : vector<8x1xf32> -> vector<8x1xf32>
    %261 = vector.broadcast %260 : vector<8x1xf32> to vector<8x8xf32>
    %262 = arith.mulf %257, %261 : vector<8x8xf32>
    %cst_106 = arith.constant dense<0.000000e+00> : vector<8x8xf32>
    %263 = tpu.matmul %262, %247, %cst_106 {dimension_numbers = #tpu.dot_dimension_numbers<[1], [0], [0], [1], [0, 0, 1, 1], [], []>} : vector<8x8xf32>, vector<8x8xf32>, vector<8x8xf32> -> vector<8x8xf32>
    %264 = vector.extract_strided_slice %215 {offsets = [0, 16], sizes = [8, 8], strides = [1, 1]} : vector<8x32xf32> to vector<8x8xf32>
    %265 = vector.extract_strided_slice %220 {offsets = [0, 16], sizes = [8, 8], strides = [1, 1]} : vector<8x32xf32> to vector<8x8xf32>
    %266 = vector.extract_strided_slice %225 {offsets = [0, 16], sizes = [8, 8], strides = [1, 1]} : vector<8x32xf32> to vector<8x8xf32>
    %267 = tpu.transpose %265, [1, 0] : vector<8x8xf32> -> vector<8x8xf32>
    %cst_107 = arith.constant dense<0.000000e+00> : vector<8x8xf32>
    %268 = tpu.matmul %264, %267, %cst_107 {dimension_numbers = #tpu.dot_dimension_numbers<[1], [0], [0], [1], [0, 0, 1, 1], [], []>} : vector<8x8xf32>, vector<8x8xf32>, vector<8x8xf32> -> vector<8x8xf32>
    %cst_108 = arith.constant 0.353553385 : f32
    %269 = vector.broadcast %cst_108 : f32 to vector<8x8xf32>
    %270 = arith.mulf %268, %269 : vector<8x8xf32>
    %271 = arith.addf %270, %11 : vector<8x8xf32>
    %cst_109 = arith.constant dense<0xFF800000> : vector<8xf32>
    %272 = vector.multi_reduction <maximumf>, %271, %cst_109 [1] : vector<8x8xf32> to vector<8xf32>
    %273 = vector.shape_cast %272 : vector<8xf32> to vector<8x1xf32>
    %274 = vector.broadcast %273 : vector<8x1xf32> to vector<8x8xf32>
    %275 = arith.subf %271, %274 : vector<8x8xf32>
    %276 = math.exp %275 : vector<8x8xf32>
    %cst_110 = arith.constant dense<0.000000e+00> : vector<8xf32>
    %277 = vector.multi_reduction <add>, %276, %cst_110 [1] : vector<8x8xf32> to vector<8xf32>
    %278 = vector.shape_cast %277 : vector<8xf32> to vector<8x1xf32>
    %279 = tpu.reciprocal %278 {approx = true} : vector<8x1xf32> -> vector<8x1xf32>
    %280 = vector.broadcast %279 : vector<8x1xf32> to vector<8x8xf32>
    %281 = arith.mulf %276, %280 : vector<8x8xf32>
    %cst_111 = arith.constant dense<0.000000e+00> : vector<8x8xf32>
    %282 = tpu.matmul %281, %266, %cst_111 {dimension_numbers = #tpu.dot_dimension_numbers<[1], [0], [0], [1], [0, 0, 1, 1], [], []>} : vector<8x8xf32>, vector<8x8xf32>, vector<8x8xf32> -> vector<8x8xf32>
    %283 = vector.extract_strided_slice %215 {offsets = [0, 24], sizes = [8, 8], strides = [1, 1]} : vector<8x32xf32> to vector<8x8xf32>
    %284 = vector.extract_strided_slice %220 {offsets = [0, 24], sizes = [8, 8], strides = [1, 1]} : vector<8x32xf32> to vector<8x8xf32>
    %285 = vector.extract_strided_slice %225 {offsets = [0, 24], sizes = [8, 8], strides = [1, 1]} : vector<8x32xf32> to vector<8x8xf32>
    %286 = tpu.transpose %284, [1, 0] : vector<8x8xf32> -> vector<8x8xf32>
    %cst_112 = arith.constant dense<0.000000e+00> : vector<8x8xf32>
    %287 = tpu.matmul %283, %286, %cst_112 {dimension_numbers = #tpu.dot_dimension_numbers<[1], [0], [0], [1], [0, 0, 1, 1], [], []>} : vector<8x8xf32>, vector<8x8xf32>, vector<8x8xf32> -> vector<8x8xf32>
    %cst_113 = arith.constant 0.353553385 : f32
    %288 = vector.broadcast %cst_113 : f32 to vector<8x8xf32>
    %289 = arith.mulf %287, %288 : vector<8x8xf32>
    %290 = arith.addf %289, %11 : vector<8x8xf32>
    %cst_114 = arith.constant dense<0xFF800000> : vector<8xf32>
    %291 = vector.multi_reduction <maximumf>, %290, %cst_114 [1] : vector<8x8xf32> to vector<8xf32>
    %292 = vector.shape_cast %291 : vector<8xf32> to vector<8x1xf32>
    %293 = vector.broadcast %292 : vector<8x1xf32> to vector<8x8xf32>
    %294 = arith.subf %290, %293 : vector<8x8xf32>
    %295 = math.exp %294 : vector<8x8xf32>
    %cst_115 = arith.constant dense<0.000000e+00> : vector<8xf32>
    %296 = vector.multi_reduction <add>, %295, %cst_115 [1] : vector<8x8xf32> to vector<8xf32>
    %297 = vector.shape_cast %296 : vector<8xf32> to vector<8x1xf32>
    %298 = tpu.reciprocal %297 {approx = true} : vector<8x1xf32> -> vector<8x1xf32>
    %299 = vector.broadcast %298 : vector<8x1xf32> to vector<8x8xf32>
    %300 = arith.mulf %295, %299 : vector<8x8xf32>
    %cst_116 = arith.constant dense<0.000000e+00> : vector<8x8xf32>
    %301 = tpu.matmul %300, %285, %cst_116 {dimension_numbers = #tpu.dot_dimension_numbers<[1], [0], [0], [1], [0, 0, 1, 1], [], []>} : vector<8x8xf32>, vector<8x8xf32>, vector<8x8xf32> -> vector<8x8xf32>
    %302 = tpu.concatenate %244, %263, %282, %301 in 1 : vector<8x8xf32>, vector<8x8xf32>, vector<8x8xf32>, vector<8x8xf32> -> vector<8x32xf32>
    %c1_117 = arith.constant 1 : index
    %c0_118 = arith.constant 0 : index
    %c96_119 = arith.constant 96 : index
    %303 = vector.load %arg3[%c1_117, %c0_118, %c96_119] : memref<2x32x192xf32, #tpu.memory_space<vmem>>, vector<1x32x32xf32>
    %304 = vector.shape_cast %303 : vector<1x32x32xf32> to vector<32x32xf32>
    %cst_120 = arith.constant dense<0.000000e+00> : vector<8x32xf32>
    %305 = tpu.matmul %302, %304, %cst_120 {dimension_numbers = #tpu.dot_dimension_numbers<[1], [0], [0], [1], [0, 0, 1, 1], [], []>} : vector<8x32xf32>, vector<32x32xf32>, vector<8x32xf32> -> vector<8x32xf32>
    %c1_121 = arith.constant 1 : index
    %c3_122 = arith.constant 3 : index
    %c0_123 = arith.constant 0 : index
    %306 = vector.load %arg5[%c1_121, %c3_122, %c0_123] : memref<2x12x32xf32, #tpu.memory_space<vmem>>, vector<1x1x32xf32>
    %307 = vector.shape_cast %306 : vector<1x1x32xf32> to vector<1x32xf32>
    %308 = vector.broadcast %307 : vector<1x32xf32> to vector<8x32xf32>
    %309 = arith.addf %305, %308 : vector<8x32xf32>
    %310 = arith.addf %207, %309 : vector<8x32xf32>
    %c1_124 = arith.constant 1 : index
    %c6_125 = arith.constant 6 : index
    %c0_126 = arith.constant 0 : index
    %311 = vector.load %arg5[%c1_124, %c6_125, %c0_126] : memref<2x12x32xf32, #tpu.memory_space<vmem>>, vector<1x1x32xf32>
    %312 = vector.shape_cast %311 : vector<1x1x32xf32> to vector<1x32xf32>
    %c1_127 = arith.constant 1 : index
    %c7_128 = arith.constant 7 : index
    %c0_129 = arith.constant 0 : index
    %313 = vector.load %arg5[%c1_127, %c7_128, %c0_129] : memref<2x12x32xf32, #tpu.memory_space<vmem>>, vector<1x1x32xf32>
    %314 = vector.shape_cast %313 : vector<1x1x32xf32> to vector<1x32xf32>
    %cst_130 = arith.constant dense<0.000000e+00> : vector<8xf32>
    %315 = vector.multi_reduction <add>, %310, %cst_130 [1] : vector<8x32xf32> to vector<8xf32>
    %316 = vector.shape_cast %315 : vector<8xf32> to vector<8x1xf32>
    %cst_131 = arith.constant 3.200000e+01 : f32
    %317 = vector.broadcast %cst_131 : f32 to vector<8x1xf32>
    %318 = arith.divf %316, %317 : vector<8x1xf32>
    %319 = vector.broadcast %318 : vector<8x1xf32> to vector<8x32xf32>
    %320 = arith.subf %310, %319 : vector<8x32xf32>
    %321 = arith.mulf %320, %320 : vector<8x32xf32>
    %cst_132 = arith.constant dense<0.000000e+00> : vector<8xf32>
    %322 = vector.multi_reduction <add>, %321, %cst_132 [1] : vector<8x32xf32> to vector<8xf32>
    %323 = vector.shape_cast %322 : vector<8xf32> to vector<8x1xf32>
    %cst_133 = arith.constant 3.200000e+01 : f32
    %324 = vector.broadcast %cst_133 : f32 to vector<8x1xf32>
    %325 = arith.divf %323, %324 : vector<8x1xf32>
    %cst_134 = arith.constant 9.99999974E-6 : f32
    %326 = vector.broadcast %cst_134 : f32 to vector<8x1xf32>
    %327 = arith.addf %325, %326 : vector<8x1xf32>
    %328 = math.rsqrt %327 : vector<8x1xf32>
    %329 = vector.broadcast %328 : vector<8x1xf32> to vector<8x32xf32>
    %330 = arith.mulf %320, %329 : vector<8x32xf32>
    %331 = vector.broadcast %312 : vector<1x32xf32> to vector<8x32xf32>
    %332 = arith.mulf %330, %331 : vector<8x32xf32>
    %333 = vector.broadcast %314 : vector<1x32xf32> to vector<8x32xf32>
    %334 = arith.addf %332, %333 : vector<8x32xf32>
    %c1_135 = arith.constant 1 : index
    %c4_136 = arith.constant 4 : index
    %c0_137 = arith.constant 0 : index
    %335 = vector.load %arg5[%c1_135, %c4_136, %c0_137] : memref<2x12x32xf32, #tpu.memory_space<vmem>>, vector<1x1x32xf32>
    %336 = vector.shape_cast %335 : vector<1x1x32xf32> to vector<1x32xf32>
    %337 = vector.broadcast %336 : vector<1x32xf32> to vector<8x32xf32>
    %338 = arith.addf %334, %337 : vector<8x32xf32>
    %c1_138 = arith.constant 1 : index
    %c8_139 = arith.constant 8 : index
    %c0_140 = arith.constant 0 : index
    %339 = vector.load %arg5[%c1_138, %c8_139, %c0_140] : memref<2x12x32xf32, #tpu.memory_space<vmem>>, vector<1x1x32xf32>
    %340 = vector.shape_cast %339 : vector<1x1x32xf32> to vector<1x32xf32>
    %c1_141 = arith.constant 1 : index
    %c9_142 = arith.constant 9 : index
    %c0_143 = arith.constant 0 : index
    %341 = vector.load %arg5[%c1_141, %c9_142, %c0_143] : memref<2x12x32xf32, #tpu.memory_space<vmem>>, vector<1x1x32xf32>
    %342 = vector.shape_cast %341 : vector<1x1x32xf32> to vector<1x32xf32>
    %cst_144 = arith.constant dense<0.000000e+00> : vector<8xf32>
    %343 = vector.multi_reduction <add>, %338, %cst_144 [1] : vector<8x32xf32> to vector<8xf32>
    %344 = vector.shape_cast %343 : vector<8xf32> to vector<8x1xf32>
    %cst_145 = arith.constant 3.200000e+01 : f32
    %345 = vector.broadcast %cst_145 : f32 to vector<8x1xf32>
    %346 = arith.divf %344, %345 : vector<8x1xf32>
    %347 = vector.broadcast %346 : vector<8x1xf32> to vector<8x32xf32>
    %348 = arith.subf %338, %347 : vector<8x32xf32>
    %349 = arith.mulf %348, %348 : vector<8x32xf32>
    %cst_146 = arith.constant dense<0.000000e+00> : vector<8xf32>
    %350 = vector.multi_reduction <add>, %349, %cst_146 [1] : vector<8x32xf32> to vector<8xf32>
    %351 = vector.shape_cast %350 : vector<8xf32> to vector<8x1xf32>
    %cst_147 = arith.constant 3.200000e+01 : f32
    %352 = vector.broadcast %cst_147 : f32 to vector<8x1xf32>
    %353 = arith.divf %351, %352 : vector<8x1xf32>
    %cst_148 = arith.constant 9.99999974E-6 : f32
    %354 = vector.broadcast %cst_148 : f32 to vector<8x1xf32>
    %355 = arith.addf %353, %354 : vector<8x1xf32>
    %356 = math.rsqrt %355 : vector<8x1xf32>
    %357 = vector.broadcast %356 : vector<8x1xf32> to vector<8x32xf32>
    %358 = arith.mulf %348, %357 : vector<8x32xf32>
    %359 = vector.broadcast %340 : vector<1x32xf32> to vector<8x32xf32>
    %360 = arith.mulf %358, %359 : vector<8x32xf32>
    %361 = vector.broadcast %342 : vector<1x32xf32> to vector<8x32xf32>
    %362 = arith.addf %360, %361 : vector<8x32xf32>
    %c1_149 = arith.constant 1 : index
    %c0_150 = arith.constant 0 : index
    %c128_151 = arith.constant 128 : index
    %363 = vector.load %arg3[%c1_149, %c0_150, %c128_151] : memref<2x32x192xf32, #tpu.memory_space<vmem>>, vector<1x32x64xf32>
    %364 = vector.shape_cast %363 : vector<1x32x64xf32> to vector<32x64xf32>
    %cst_152 = arith.constant dense<0.000000e+00> : vector<8x64xf32>
    %365 = tpu.matmul %362, %364, %cst_152 {dimension_numbers = #tpu.dot_dimension_numbers<[1], [0], [0], [1], [0, 0, 1, 1], [], []>} : vector<8x32xf32>, vector<32x64xf32>, vector<8x64xf32> -> vector<8x64xf32>
    %c1_153 = arith.constant 1 : index
    %c0_154 = arith.constant 0 : index
    %c0_155 = arith.constant 0 : index
    %366 = vector.load %arg6[%c1_153, %c0_154, %c0_155] : memref<2x1x64xf32, #tpu.memory_space<vmem>>, vector<1x1x64xf32>
    %367 = vector.shape_cast %366 : vector<1x1x64xf32> to vector<1x64xf32>
    %368 = vector.broadcast %367 : vector<1x64xf32> to vector<8x64xf32>
    %369 = arith.addf %365, %368 : vector<8x64xf32>
    %cst_156 = arith.constant 0.000000e+00 : f32
    %370 = vector.broadcast %cst_156 : f32 to vector<8x64xf32>
    %371 = arith.maximumf %369, %370 : vector<8x64xf32>
    %c1_157 = arith.constant 1 : index
    %c0_158 = arith.constant 0 : index
    %c0_159 = arith.constant 0 : index
    %372 = vector.load %arg4[%c1_157, %c0_158, %c0_159] : memref<2x64x32xf32, #tpu.memory_space<vmem>>, vector<1x64x32xf32>
    %373 = vector.shape_cast %372 : vector<1x64x32xf32> to vector<64x32xf32>
    %cst_160 = arith.constant dense<0.000000e+00> : vector<8x32xf32>
    %374 = tpu.matmul %371, %373, %cst_160 {dimension_numbers = #tpu.dot_dimension_numbers<[1], [0], [0], [1], [0, 0, 1, 1], [], []>} : vector<8x64xf32>, vector<64x32xf32>, vector<8x32xf32> -> vector<8x32xf32>
    %c1_161 = arith.constant 1 : index
    %c5_162 = arith.constant 5 : index
    %c0_163 = arith.constant 0 : index
    %375 = vector.load %arg5[%c1_161, %c5_162, %c0_163] : memref<2x12x32xf32, #tpu.memory_space<vmem>>, vector<1x1x32xf32>
    %376 = vector.shape_cast %375 : vector<1x1x32xf32> to vector<1x32xf32>
    %377 = vector.broadcast %376 : vector<1x32xf32> to vector<8x32xf32>
    %378 = arith.addf %374, %377 : vector<8x32xf32>
    %379 = arith.addf %362, %378 : vector<8x32xf32>
    %c1_164 = arith.constant 1 : index
    %c10_165 = arith.constant 10 : index
    %c0_166 = arith.constant 0 : index
    %380 = vector.load %arg5[%c1_164, %c10_165, %c0_166] : memref<2x12x32xf32, #tpu.memory_space<vmem>>, vector<1x1x32xf32>
    %381 = vector.shape_cast %380 : vector<1x1x32xf32> to vector<1x32xf32>
    %c1_167 = arith.constant 1 : index
    %c11_168 = arith.constant 11 : index
    %c0_169 = arith.constant 0 : index
    %382 = vector.load %arg5[%c1_167, %c11_168, %c0_169] : memref<2x12x32xf32, #tpu.memory_space<vmem>>, vector<1x1x32xf32>
    %383 = vector.shape_cast %382 : vector<1x1x32xf32> to vector<1x32xf32>
    %cst_170 = arith.constant dense<0.000000e+00> : vector<8xf32>
    %384 = vector.multi_reduction <add>, %379, %cst_170 [1] : vector<8x32xf32> to vector<8xf32>
    %385 = vector.shape_cast %384 : vector<8xf32> to vector<8x1xf32>
    %cst_171 = arith.constant 3.200000e+01 : f32
    %386 = vector.broadcast %cst_171 : f32 to vector<8x1xf32>
    %387 = arith.divf %385, %386 : vector<8x1xf32>
    %388 = vector.broadcast %387 : vector<8x1xf32> to vector<8x32xf32>
    %389 = arith.subf %379, %388 : vector<8x32xf32>
    %390 = arith.mulf %389, %389 : vector<8x32xf32>
    %cst_172 = arith.constant dense<0.000000e+00> : vector<8xf32>
    %391 = vector.multi_reduction <add>, %390, %cst_172 [1] : vector<8x32xf32> to vector<8xf32>
    %392 = vector.shape_cast %391 : vector<8xf32> to vector<8x1xf32>
    %cst_173 = arith.constant 3.200000e+01 : f32
    %393 = vector.broadcast %cst_173 : f32 to vector<8x1xf32>
    %394 = arith.divf %392, %393 : vector<8x1xf32>
    %cst_174 = arith.constant 9.99999974E-6 : f32
    %395 = vector.broadcast %cst_174 : f32 to vector<8x1xf32>
    %396 = arith.addf %394, %395 : vector<8x1xf32>
    %397 = math.rsqrt %396 : vector<8x1xf32>
    %398 = vector.broadcast %397 : vector<8x1xf32> to vector<8x32xf32>
    %399 = arith.mulf %389, %398 : vector<8x32xf32>
    %400 = vector.broadcast %381 : vector<1x32xf32> to vector<8x32xf32>
    %401 = arith.mulf %399, %400 : vector<8x32xf32>
    %402 = vector.broadcast %383 : vector<1x32xf32> to vector<8x32xf32>
    %403 = arith.addf %401, %402 : vector<8x32xf32>
    %c0_175 = arith.constant 0 : index
    %c0_176 = arith.constant 0 : index
    %c0_177 = arith.constant 0 : index
    %404 = vector.load %arg7[%c0_175, %c0_176, %c0_177] : memref<1x8x32xf32, #tpu.memory_space<vmem>>, vector<1x8x32xf32>
    %405 = vector.shape_cast %404 : vector<1x8x32xf32> to vector<8x32xf32>
    %406 = vector.shape_cast %403 : vector<8x32xf32> to vector<1x8x32xf32>
    tpu.vector_store %arg7[%c0_175, %c0_176, %c0_177], %406 {strides = array<i32>} : memref<1x8x32xf32, #tpu.memory_space<vmem>>, vector<1x8x32xf32>,
    return
  }
  func.func @transform_0(%arg0: i32) -> (i32, i32, i32) {
    %c0_i32 = arith.constant 0 : i32
    %c0_i32_0 = arith.constant 0 : i32
    %c0_i32_1 = arith.constant 0 : i32
    return %arg0, %c0_i32, %c0_i32_0 : i32, i32, i32
  }
  func.func @transform_1(%arg0: i32) -> (i32, i32, i32) {
    %c0_i32 = arith.constant 0 : i32
    %c0_i32_0 = arith.constant 0 : i32
    %c0_i32_1 = arith.constant 0 : i32
    return %arg0, %c0_i32, %c0_i32_0 : i32, i32, i32
  }
  func.func @transform_2(%arg0: i32) -> (i32, i32, i32) {
    %c0_i32 = arith.constant 0 : i32
    %c0_i32_0 = arith.constant 0 : i32
    %c0_i32_1 = arith.constant 0 : i32
    %c0_i32_2 = arith.constant 0 : i32
    return %c0_i32, %c0_i32_0, %c0_i32_1 : i32, i32, i32
  }
  func.func @transform_3(%arg0: i32) -> (i32, i32, i32) {
    %c0_i32 = arith.constant 0 : i32
    %c0_i32_0 = arith.constant 0 : i32
    %c0_i32_1 = arith.constant 0 : i32
    %c0_i32_2 = arith.constant 0 : i32
    return %c0_i32, %c0_i32_0, %c0_i32_1 : i32, i32, i32
  }
  func.func @transform_4(%arg0: i32) -> (i32, i32, i32) {
    %c0_i32 = arith.constant 0 : i32
    %c0_i32_0 = arith.constant 0 : i32
    %c0_i32_1 = arith.constant 0 : i32
    %c0_i32_2 = arith.constant 0 : i32
    return %c0_i32, %c0_i32_0, %c0_i32_1 : i32, i32, i32
  }
  func.func @transform_5(%arg0: i32) -> (i32, i32, i32) {
    %c0_i32 = arith.constant 0 : i32
    %c0_i32_0 = arith.constant 0 : i32
    %c0_i32_1 = arith.constant 0 : i32
    %c0_i32_2 = arith.constant 0 : i32
    return %c0_i32, %c0_i32_0, %c0_i32_1 : i32, i32, i32
  }
  func.func @transform_6(%arg0: i32) -> (i32, i32, i32) {
    %c0_i32 = arith.constant 0 : i32
    %c0_i32_0 = arith.constant 0 : i32
    %c0_i32_1 = arith.constant 0 : i32
    return %arg0, %c0_i32, %c0_i32_0 : i32, i32, i32
  }
}

</mosaic_0001>

<bundles_post_ra>
// kernel: tpu_custom_call.1
= control target key start
LH: loop header
LB: loop body
LE: loop exit
PB: predicated region body
PF: predicated region fallthrough
CT: control target
= control target key end

     0   :  { %11 = vsyncpa [#allocation3], 0  ;;  %s3756_s0 = inlined_call_operand.vmem [shape: f32[2,8,32], index: 0, kind: input, shape index: {}]   ;;  %s3757_s1 = inlined_call_operand.vmem [shape: f32[2,1,8], index: 1, kind: input, shape index: {}]   ;;  %s3758_s2 = inlined_call_operand.vmem [shape: f32[2,32,192], index: 2, kind: input, shape index: {}]   ;;  %s3759_s3 = inlined_call_operand.vmem [shape: f32[2,64,32], index: 3, kind: input, shape index: {}]   ;;  %s3760_s4 = inlined_call_operand.vmem [shape: f32[2,12,32], index: 4, kind: input, shape index: {}]   ;;  %s3761_s5 = inlined_call_operand.vmem [shape: f32[2,1,64], index: 5, kind: input, shape index: {}]   ;;  %s3762_s6 = inlined_call_operand.hbm [shape: f32[2,8,32], index: 6, kind: output, shape index: {}]  }
   0x1   :  { %13 = vsyncpa [#allocation3 + $0x1], 0  ;;  %s3216_s21 = smov 0   ;;  %s3218_s22 = smov 0  }
   0x2   :  { %s3220_s23 = smov 0   ;;  %s3222_s24 = smov 0  }
   0x3 LB: > { %s3237_s25 = sadd.s32 4294967295, %s3161_s24   ;;  %s2639_s26 = sadd.s32 4294967294, %s3161_s24   ;;  %s3161_s24 = sphi %s3222_s24, %s3785_s24   ;;  %s3157_s23 = sphi %s3220_s23, %s3784_s23   ;;  %s3153_s22 = sphi %s3218_s22, %s3783_s22   ;;  %s3149_s21 = sphi %s3216_s21, %s3782_s21  }
   0x4   : > { %s3241_s27 = sadd.s32 1, %s3161_s24   ;;  %s162_s28 = sadd.s32 1, %s3157_s23 }
   0x5   : > { %s159_s29 = ssub.s32 %s3161_s24, %s3241_s27  ;;  %p172_p0 = scmp.ne.s32.totalorder %s3157_s23, %s3153_s22 }
   0x6   : > { %p160_p1 = scmp.eq.s32.totalorder %s159_s29, 0  ;;  %p173_p2 = scmp.eq.s32.totalorder %s3237_s25, 1 }
   0x7   : > { %p178_p3 = scmp.ne.s32.totalorder %s3153_s22, %s3149_s21  ;;  %p179_p4 = scmp.eq.s32.totalorder %s2639_s26, 1 }
   0x8   : > { %s3252_s30 = scalar_select %p160_p1, %s3157_s23, %s162_s28  }
   0x9   : > { %p3254_p5 = por %p173_p2, %p172_p0  ;;  %p3258_p6 = por %p179_p4, %p178_p3 }
   0xa   : > { %p2642_p7 = scmp.ge.s32.totalorder %s3161_s24, 1  ;;  %p222_p8 = scmp.lt.s32.totalorder %s3161_s24, 3 }
   0xc   : > { %p223_p9 = pnand %p2642_p7, %p222_p8 }
   0xd   : > { %p254_p10 = scmp.lt.s32.totalorder (!%p223_p9), %s3237_s25, 1  ;;  %s3165_s16 = smov (!%p223_p9), 32  }
   0xe   : > { %226 = sbr.rel (%p223_p9) target bundleno = 5361 (0x14f1), region = 44  ;;  %s3166_s12 = smov (!%p223_p9), 88  }
   0xf   : > { %s3167_s13 = smov (!%p223_p9), 96   ;;  %s3168_s14 = smov (!%p223_p9), 80  }
  0x10   : > { %s3169_s17 = smov (!%p223_p9), 120   ;;  %s3170_s18 = smov (!%p223_p9), 72  }
  0x11   : > { %s3771_s20 = smov (!%p223_p9), 104   ;;  %s3769_s10 = smov (!%p223_p9), 64  }
  0x12   : > { %s3768_s11 = smov (!%p223_p9), 48   ;;  %s3767_s26 = smov (!%p223_p9), 40  }
  0x13   : > { %v3267_v0 = vld [vmem:[%s3758_s2 + $0x30] sm:$0xff]  ;;  %v3163_v1 = vmov 0.0   ;;  %v3274_v2 = vld [vmem:[%s3758_s2 + $0x20] sm:$0xff]  ;;  %vm3164_vm0 = vmmov 0   ;;  %s3283_s15 = scalar_select %p254_p10, %s3237_s25, 1  ;;  %vm280_vm1 = vcmask 261120   ;;  %v263_v20 = vlaneseq }
  0x14   : > { %2817 = vmatprep.subr.mxu1 %v3163_v1  ;;  %2825 = vmatprep.mubr.msk.f32.mxu1 %vm3164_vm0, %v3163_v1  ;;  %v2648_v3 = vld [vmem:[%s3760_s4 + $0x1] ss:$0 sm:$0xff]  ;;  %v3290_v4 = vld [vmem:[%s3758_s2 + $0x10] sm:$0xff]  ;;  %v2647_v10 = vld [vmem:[%s3760_s4] ss:$0 sm:$0xff]  ;;  %vm383_vm2 = vcmask 64512  }
  0x15   : > { %2818 = vmatpush3.msra.mxu1 %v3267_v0  ;;  %366 = vrot.lane.b32.xlu0 %v2648_v3, %s3165_s16  ;;  %s2644_s19 = sshll.u32 %s3283_s15, 3  ;;  %v3301_v5 = vld [vmem:[%s3758_s2] sm:$0xff]  ;;  %v264_v21 = vshrl.u32 %v263_v20, 7  ;;  %v266_v22 = vand.u32 127, %v263_v20  ;;  %s260_s29 = scalar_lea.vmem %s3757_s1, %s3283_s15  ;;  %vm1063_vm4 = vcmask 130048   ;;  %vm1065_vm5 = vcmask 195584  }
  0x16   : > { %2819 = vmatprep.subr.mxu1 %v3163_v1  ;;  %2838 = vmatprep.subr.mxu0 %v3163_v1  ;;  %s257_s9 = scalar_lea.vmem %s3756_s0, %s2644_s19  ;;  %s3171_s19 = smov 112   ;;  %v2645_v23 = vld [vmem:[%s260_s29] ss:$0 sm:$0xff]  ;;  %v2649_v46 = vld [vmem:[%s3760_s4 + $0x2] ss:$0 sm:$0xff]  ;;  %vm1317_vm6 = vcmask 523264  }
  0x17   : > { %2820 = vmatpush3.msra.mxu1 %v3274_v2  ;;  %2840 = vmatprep.mubr.msk.f32.mxu0 %vm3164_vm0, %v3163_v1  ;;  %v3307_v6 = vld [vmem:[%s257_s9] sm:$0xff]  ;;  %vm267_vm3 = vcmp.gt.s32.totalorder %v266_v22, %v264_v21  ;;  %s3766_s28 = smov 56   ;;  %s3765_s29 = smov 8  }
  0x18   : > { %2821 = vmatprep.subr.mxu1 %v3163_v1  ;;  %v268_v24 = vsel %vm267_vm3, -1e+30, %v3163_v1  ;;  %s3764_s15 = smov 16   ;;  %s3763_s9 = smov 24  }
  0x19   : > { %2822 = vmatpush3.msra.mxu1 %v3290_v4  ;;  %v3355_v25 = vadd.f32 %v2645_v23, %v268_v24 }
  0x1a   : > { %2823 = vmatprep.subr.mxu1 %v3163_v1 }
  0x1b   : > { %2824 = vmatpush3.msra.mxu1 %v3301_v5 }
  0x1c   : > { %2826 = vmatmul.mubr.msk.f32.vlgmr.msra.gmra.mxu1 %vm280_vm1, %v3307_v6  ;;  %2828 = vmatprep.subr.mxu1 %v3163_v1 }
  0x1d   : > { %2830 = vmatprep.mubr.msk.f32.mxu1 %vm3164_vm0, %v3163_v1 }
  0x87   : > { %v367_v7 = vpop.permute.xlu0 %366 }
  0xdc   : > { %v3316_v8 = vpop.f32.mrf.mxu1 }
  0xdd   : > { %v369_v9 = vadd.f32 %v367_v7, %v3316_v8  ;;  %v359_v12 = vadd.f32 %v2647_v10, %v3316_v8 }
  0xde   : > { %v2827_v11 = vpop.f32.mrf.mxu1 }
  0xdf   : > { %551 = vrot.lane.b32.xlu1 %v369_v9, %s3166_s12  ;;  %381 = vrot.lane.b32.xlu0 %v369_v9, %s3167_s13 }
  0xe3   : > { %718 = vrot.lane.b32.xlu0 %v369_v9, %s3168_s14  ;;  %549 = vrot.lane.b32.xlu1 %v359_v12, %s3169_s17 }
  0xe7   : > { %885 = vrot.lane.b32.xlu0 %v369_v9, %s3170_s18  ;;  %716 = vrot.lane.b32.xlu1 %v359_v12, %s3171_s19 }
  0xeb   : > { %883 = vrot.lane.b32.xlu1 %v359_v12, %s3771_s20 }
 0x151   : > { %v552_v13 = vpop.permute.xlu1 %551  ;;  %v382_v14 = vpop.permute.xlu0 %381 }
 0x152   : > { %2829 = vmatpush3.xpose.msk.msra.mxu1 %vm383_vm2, %v382_v14  ;;  %2839 = vmatpush3.xpose.msk.msra.mxu0 %vm383_vm2, %v552_v13 }
 0x153   : > { %2848 = vmatprep.subr.mxu0 %v3163_v1  ;;  %2833 = vmatprep.subr.mxu1 %v3163_v1 }
 0x155   : > { %v719_v15 = vpop.permute.xlu0 %718  ;;  %v550_v16 = vpop.permute.xlu1 %549  ;;  %2831 = vmatmul.mubr.msk.f32.vlgmr.msra.gmra.mxu1 %vm383_vm2, %v359_v12 }
 0x156   : > { %2841 = vmatmul.mubr.msk.f32.vlgmr.msra.gmra.mxu0 %vm383_vm2, %v550_v16  ;;  %2835 = vmatprep.mubr.msk.f32.mxu1 %vm3164_vm0, %v3163_v1 }
 0x157   : > { %2849 = vmatpush3.xpose.msk.msra.mxu0 %vm383_vm2, %v719_v15  ;;  %2850 = vmatprep.mubr.msk.f32.mxu0 %vm3164_vm0, %v3163_v1 }
 0x158   : > { %2858 = vmatprep.subr.mxu0 %v3163_v1 }
 0x159   : > { %v886_v17 = vpop.permute.xlu0 %885  ;;  %v717_v18 = vpop.permute.xlu1 %716 }
 0x15a   : > { %2851 = vmatmul.mubr.msk.f32.vlgmr.msra.gmra.mxu0 %vm383_vm2, %v717_v18 }
 0x15b   : > { %2859 = vmatpush3.xpose.msk.msra.mxu0 %vm383_vm2, %v886_v17  ;;  %2860 = vmatprep.mubr.msk.f32.mxu0 %vm3164_vm0, %v3163_v1 }
 0x15c   : > { %2868 = vmatprep.subr.mxu0 %v3163_v1 }
 0x15d   : > { %v884_v19 = vpop.permute.xlu1 %883 }
 0x15e   : > { %2861 = vmatmul.mubr.msk.f32.vlgmr.msra.gmra.mxu0 %vm383_vm2, %v884_v19 }
 0x15f   : > { %2876 = vmatprep.mubr.msk.f32.mxu0 %vm3164_vm0, %v3163_v1 }
 0x215   : > { %v455_v26 = vpop.f32.mrf.mxu1 }
 0x216   : > { %v459_v27 = vmul.f32 0.35355338, %v455_v26  ;;  %v623_v28 = vpop.f32.mrf.mxu0 }
 0x217   : > { %v627_v29 = vmul.f32 0.35355338, %v623_v28  ;;  %v2832_v30 = vpop.f32.mrf.mxu1 }
 0x218   : > { %v2842_v31 = vpop.f32.mrf.mxu0  ;;  %v460_v32 = vadd.f32 %v459_v27, %v3355_v25 }
 0x219   : > { %v628_v33 = vadd.f32 %v627_v29, %v3355_v25 }
 0x21a   : > { %v790_v34 = vpop.f32.mrf.mxu0  ;;  %v461_v35 = vsel %vm383_vm2, %v460_v32, -inf }
 0x21b   : > { %v794_v36 = vmul.f32 0.35355338, %v790_v34  ;;  %462 = vmax.xlane.f32.xlu0 %v461_v35  ;;  %v629_v37 = vsel %vm383_vm2, %v628_v33, -inf }
 0x21c   : > { %630 = vmax.xlane.f32.xlu1 %v629_v37  ;;  %v2852_v38 = vpop.f32.mrf.mxu0 }
 0x21d   : > { %v795_v39 = vadd.f32 %v794_v36, %v3355_v25 }
 0x21e   : > { %v957_v40 = vpop.f32.mrf.mxu0 }
 0x21f   : > { %v961_v41 = vmul.f32 0.35355338, %v957_v40  ;;  %v796_v42 = vsel %vm383_vm2, %v795_v39, -inf }
 0x220   : > { %v2862_v43 = vpop.f32.mrf.mxu0  ;;  %797 = vmax.xlane.f32.xlu0 %v796_v42 }
 0x221   : > { %v962_v44 = vadd.f32 %v961_v41, %v3355_v25 }
 0x223   : > { %v963_v45 = vsel %vm383_vm2, %v962_v44, -inf }
 0x224   : > { %964 = vmax.xlane.f32.xlu0 %v963_v45 }
 0x22d   : > { %376 = vrot.lane.b32.xlu1 %v2649_v46, %s3769_s10 }
 0x2a4   : > { %v463_v47 = vpop.xlane.xlu0 %462 }
 0x2a5   : > { %v464_v48 = vsub.f32 %v460_v32, %v463_v47  ;;  %v631_v49 = vpop.xlane.xlu1 %630 }
 0x2a6   : > { %v632_v50 = vsub.f32 %v628_v33, %v631_v49 }
 0x2a7   : > { %v465_v51 = vmul.f32 1.442695, %v464_v48 }
 0x2a8   : > { %v633_v52 = vmul.f32 1.442695, %v632_v50 }
 0x2a9   : > { %3057 = vpow2.f32 %v465_v51  ;;  %v377_v53 = vpop.permute.xlu1 %376  ;;  %v798_v54 = vpop.xlane.xlu0 %797 }
 0x2aa   : > { %v379_v55 = vadd.f32 %v377_v53, %v3316_v8  ;;  %v799_v56 = vsub.f32 %v795_v39, %v798_v54  ;;  %3059 = vpow2.f32 %v633_v52 }
 0x2ac   : > { %v800_v57 = vmul.f32 1.442695, %v799_v56  ;;  %473 = vrot.lane.b32.xlu1 %v379_v55, %s3769_s10 }
 0x2ad   : > { %v965_v58 = vpop.xlane.xlu0 %964 }
 0x2ae   : > { %v966_v59 = vsub.f32 %v962_v44, %v965_v58  ;;  %3061 = vpow2.f32 %v800_v57  ;;  %v2664_v57 = vld [vmem:[%s3760_s4 + $0x6] ss:$0 sm:$0xff]  ;;  %v2665_v58 = vld [vmem:[%s3760_s4 + $0x7] ss:$0 sm:$0xff] }
 0x2b0   : > { %v967_v60 = vmul.f32 1.442695, %v966_v59  ;;  %807 = vrot.lane.b32.xlu1 %v379_v55, %s3768_s11  ;;  %s3781_s11 = smov 24  }
 0x2b2   : > { %3063 = vpow2.f32 %v967_v60  ;;  %v2666_v60 = vld [vmem:[%s3760_s4 + $0x4] ss:$0 sm:$0xff] }
 0x2b4   : > { %974 = vrot.lane.b32.xlu1 %v379_v55, %s3767_s26  ;;  %s2734_s26 = sshll.u32 %s3237_s25, 7 }
 0x2b6   : > { %v3058_v61 = vpop.eup %3057 }
 0x2b7   : > { %v467_v62 = vsel %vm383_vm2, %v3058_v61, 0.0  ;;  %v3060_v63 = vpop.eup %3059 }
 0x2b8   : > { %468 = vadd.xlane.f32.xlu0 %v467_v62  ;;  %1082 = vrot.lane.b32.xlu1 %v3267_v0, %s3165_s16  ;;  %v635_v3 = vsel %vm383_vm2, %v3060_v63, 0.0 }
 0x2bb   : > { %v3062_v7 = vpop.eup %3061 }
 0x2bc   : > { %636 = vadd.xlane.f32.xlu0 %v635_v3  ;;  %1080 = vrot.lane.b32.xlu1 %v3274_v2, %s3165_s16  ;;  %v802_v8 = vsel %vm383_vm2, %v3062_v7, 0.0 }
 0x2bf   : > { %v3064_v9 = vpop.eup %3063 }
 0x2c0   : > { %803 = vadd.xlane.f32.xlu0 %v802_v8  ;;  %v969_v10 = vsel %vm383_vm2, %v3064_v9, 0.0 }
 0x2c4   : > { %970 = vadd.xlane.f32.xlu0 %v969_v10 }
 0x2da   : > { %640 = vrot.lane.b32.xlu0 %v379_v55, %s3766_s28  ;;  %s3779_s28 = smov 8  }
 0x2de   : > { %1078 = vrot.lane.b32.xlu0 %v3290_v4, %s3165_s16 }
 0x31e   : > { %v474_v0 = vpop.permute.xlu1 %473 }
 0x31f   : > { %2834 = vmatpush3.msra.mxu1 %v474_v0  ;;  %v1222_v0 = vld [vmem:[%s3758_s2 + $0x38] sm:$0xff] }
 0x320   : > { %2843 = vmatprep.subr.mxu1 %v3163_v1 }
 0x322   : > { %v808_v4 = vpop.permute.xlu1 %807 }
 0x326   : > { %v975_v21 = vpop.permute.xlu1 %974 }
 0x32a   : > { %v1083_v24 = vpop.permute.xlu1 %1082 }
 0x32b   : > { %2869 = vmatpush3.msra.mxu0 %v1083_v24 }
 0x32c   : > { %2870 = vmatprep.subr.mxu0 %v3163_v1 }
 0x32e   : > { %v1081_v26 = vpop.permute.xlu1 %1080 }
 0x32f   : > { %2871 = vmatpush3.msra.mxu0 %v1081_v26 }
 0x330   : > { %2872 = vmatprep.subr.mxu0 %v3163_v1 }
 0x341   : > { %v469_v11 = vpop.xlane.xlu0 %468 }
 0x342   : > { %3065 = vrcp.f32 %v469_v11  ;;  %v1221_v11 = vld [vmem:[%s3758_s2 + $0x28] sm:$0xff] }
 0x345   : > { %v637_v2 = vpop.xlane.xlu0 %636 }
 0x346   : > { %3067 = vrcp.f32 %v637_v2  ;;  %v1220_v2 = vld [vmem:[%s3758_s2 + $0x18] sm:$0xff] }
 0x349   : > { %v804_v12 = vpop.xlane.xlu0 %803 }
 0x34a   : > { %3069 = vrcp.f32 %v804_v12  ;;  %v1219_v12 = vld [vmem:[%s3758_s2 + $0x8] sm:$0xff] }
 0x34d   : > { %v971_v13 = vpop.xlane.xlu0 %970 }
 0x34e   : > { %3071 = vrcp.f32 %v971_v13  ;;  %v1311_v13 = vld [vmem:[%s3759_s3 + $0x38] sm:$0xff] }
 0x34f   : > { %v3066_v14 = vpop.eup %3065 }
 0x350   : > { %v471_v15 = vmul.f32 %v3066_v14, %v3058_v61  ;;  %v1310_v14 = vld [vmem:[%s3759_s3 + $0x30] sm:$0xff] }
 0x351   : > { %v641_v16 = vpop.permute.xlu0 %640 }
 0x352   : > { %2836 = vmatmul.mubr.msk.f32.vlgmr.msra.gmra.mxu1 %vm383_vm2, %v471_v15  ;;  %v1309_v15 = vld [vmem:[%s3759_s3 + $0x28] sm:$0xff] }
 0x353   : > { %v3068_v17 = vpop.eup %3067  ;;  %2844 = vmatpush3.msra.mxu1 %v641_v16  ;;  %2845 = vmatprep.mubr.msk.f32.mxu1 %vm3164_vm0, %v3163_v1  ;;  %v1308_v16 = vld [vmem:[%s3759_s3 + $0x20] sm:$0xff] }
 0x354   : > { %2853 = vmatprep.subr.mxu1 %v3163_v1  ;;  %v639_v18 = vmul.f32 %v3068_v17, %v3060_v63  ;;  %v1307_v17 = vld [vmem:[%s3759_s3 + $0x18] sm:$0xff] }
 0x355   : > { %v1079_v27 = vpop.permute.xlu0 %1078 }
 0x356   : > { %2846 = vmatmul.mubr.msk.f32.vlgmr.msra.gmra.mxu1 %vm383_vm2, %v639_v18  ;;  %2873 = vmatpush3.msra.mxu0 %v1079_v27  ;;  %v1306_v27 = vld [vmem:[%s3759_s3 + $0x10] sm:$0xff] }
 0x357   : > { %v3070_v19 = vpop.eup %3069  ;;  %2854 = vmatpush3.msra.mxu1 %v808_v4  ;;  %2855 = vmatprep.mubr.msk.f32.mxu1 %vm3164_vm0, %v3163_v1 }
 0x358   : > { %2863 = vmatprep.subr.mxu1 %v3163_v1  ;;  %v806_v20 = vmul.f32 %v3070_v19, %v3062_v7  ;;  %2874 = vmatprep.subr.mxu0 %v3163_v1 }
 0x35a   : > { %2856 = vmatmul.mubr.msk.f32.vlgmr.msra.gmra.mxu1 %vm383_vm2, %v806_v20 }
 0x35b   : > { %v3072_v22 = vpop.eup %3071  ;;  %2864 = vmatpush3.msra.mxu1 %v975_v21  ;;  %2865 = vmatprep.mubr.msk.f32.mxu1 %vm3164_vm0, %v3163_v1  ;;  %v2667_v21 = vld [vmem:[%s3760_s4 + $0x8] ss:$0 sm:$0xff] }
 0x35c   : > { %v973_v23 = vmul.f32 %v3072_v22, %v3064_v9  ;;  %2879 = vmatprep.subr.mxu1 %v3163_v1 }
 0x35e   : > { %2866 = vmatmul.mubr.msk.f32.vlgmr.msra.gmra.mxu1 %vm383_vm2, %v973_v23  ;;  %v2668_v23 = vld [vmem:[%s3760_s4 + $0x9] ss:$0 sm:$0xff] }
 0x35f   : > { %2887 = vmatprep.mubr.msk.f32.mxu1 %vm3164_vm0, %v3163_v1  ;;  %2880 = vmatpush3.msra.mxu1 %v1222_v0 }
 0x360   : > { %2881 = vmatprep.subr.mxu1 %v3163_v1 }
 0x361   : > { %2882 = vmatpush3.msra.mxu1 %v1221_v11 }
 0x362   : > { %2883 = vmatprep.subr.mxu1 %v3163_v1 }
 0x363   : > { %2884 = vmatpush3.msra.mxu1 %v1220_v2 }
 0x364   : > { %2885 = vmatprep.subr.mxu1 %v3163_v1 }
 0x365   : > { %2886 = vmatpush3.msra.mxu1 %v1219_v12 }
 0x366   : > { %2909 = vmatprep.subr.mxu1 %v3163_v1 }
 0x412   : > { %v545_v28 = vpop.f32.mrf.mxu1 }
 0x414   : > { %v2837_v29 = vpop.f32.mrf.mxu1 }
 0x415   : > { %v1304_v29 = vld [vmem:[%s3759_s3] sm:$0xff] }
 0x416   : > { %v712_v30 = vpop.f32.mrf.mxu1 }
 0x417   : > { %1051 = vrot.lane.b32.xlu1 %v712_v30, %s3765_s29  ;;  %v2669_v30 = vld [vmem:[%s3761_s5] ss:$0 sm:$0xff]  ;;  %s3780_s29 = smov 16  }
 0x418   : > { %v2847_v31 = vpop.f32.mrf.mxu1 }
 0x41a   : > { %v879_v32 = vpop.f32.mrf.mxu1 }
 0x41b   : > { %1055 = vrot.lane.b32.xlu1 %v879_v32, %s3764_s15  ;;  %s3774_s15 = smov 104  }
 0x41c   : > { %v2857_v33 = vpop.f32.mrf.mxu1 }
 0x41e   : > { %v1046_v34 = vpop.f32.mrf.mxu1 }
 0x41f   : > { %1076 = vrot.lane.b32.xlu1 %v3301_v5, %s3165_s16  ;;  %1059 = vrot.lane.b32.xlu0 %v1046_v34, %s3763_s9  ;;  %v2662_v5 = vld [vmem:[%s3760_s4 + $0x3] ss:$0 sm:$0xff] }
 0x420   : > { %v2867_v35 = vpop.f32.mrf.mxu1 }
 0x421   : > { %v2671_v35 = vld [vmem:[%s3760_s4 + $0x5] ss:$0 sm:$0xff] }
 0x489   : > { %v1052_v36 = vpop.permute.xlu1 %1051 }
 0x48a   : > { %v1062_v38 = vsel %vm383_vm2, %v545_v28, %v1052_v36  ;;  %v1305_v28 = vld [vmem:[%s3759_s3 + $0x8] sm:$0xff] }
 0x48d   : > { %v1056_v37 = vpop.permute.xlu1 %1055 }
 0x48e   : > { %v1064_v39 = vsel %vm1063_vm4, %v1062_v38, %v1056_v37 }
 0x491   : > { %v1077_v40 = vpop.permute.xlu1 %1076  ;;  %v1060_v41 = vpop.permute.xlu0 %1059 }
 0x492   : > { %v1066_v42 = vsel %vm1065_vm5, %v1064_v39, %v1060_v41  ;;  %2875 = vmatpush3.msra.mxu0 %v1077_v40 }
 0x493   : > { %2877 = vmatmul.mubr.msk.f32.vlgmr.msra.gmra.mxu0 %vm280_vm1, %v1066_v42  ;;  %2890 = vmatprep.subr.mxu0 %v3163_v1 }
 0x494   : > { %2906 = vmatprep.mubr.msk.f32.mxu0 %vm3164_vm0, %v3163_v1  ;;  %2891 = vmatpush3.msra.mxu0 %v1311_v13 }
 0x495   : > { %2892 = vmatprep.subr.mxu0 %v3163_v1 }
 0x496   : > { %2893 = vmatpush3.msra.mxu0 %v1310_v14 }
 0x497   : > { %2894 = vmatprep.subr.mxu0 %v3163_v1 }
 0x498   : > { %2895 = vmatpush3.msra.mxu0 %v1309_v15 }
 0x499   : > { %2896 = vmatprep.subr.mxu0 %v3163_v1 }
 0x49a   : > { %2897 = vmatpush3.msra.mxu0 %v1308_v16 }
 0x49b   : > { %2898 = vmatprep.subr.mxu0 %v3163_v1 }
 0x49c   : > { %2899 = vmatpush3.msra.mxu0 %v1307_v17 }
 0x49d   : > { %2900 = vmatprep.subr.mxu0 %v3163_v1 }
 0x49e   : > { %2901 = vmatpush3.msra.mxu0 %v1306_v27 }
 0x49f   : > { %2902 = vmatprep.subr.mxu0 %v3163_v1 }
 0x4a0   : > { %2903 = vmatpush3.msra.mxu0 %v1305_v28 }
 0x4a1   : > { %2904 = vmatprep.subr.mxu0 %v3163_v1 }
 0x4a2   : > { %2905 = vmatpush3.msra.mxu0 %v1304_v29 }
 0x4a3   : > { %2930 = vmatprep.subr.mxu0 %v3163_v1 }
 0x553   : > { %v1157_v43 = vpop.f32.mrf.mxu0 }
 0x554   : > { %v1158_v44 = vadd.f32 %v2662_v5, %v1157_v43 }
 0x555   : > { %v2878_v45 = vpop.f32.mrf.mxu0 }
 0x556   : > { %v1161_v46 = vadd.f32 %v1158_v44, %v3307_v6  ;;  %v3503_v45 = vld [vmem:[%s3758_s2 + $0x70] sm:$0xff] }
 0x558   : > { %v1164_v47 = vsel %vm280_vm1, %v1161_v46, 0.0 }
 0x559   : > { %1165 = vadd.xlane.f32.xlu0 %v1164_v47  ;;  %v3515_v47 = vld [vmem:[%s3758_s2 + $0x50] sm:$0xff] }
 0x5e2   : > { %v1166_v48 = vpop.xlane.xlu0 %1165 }
 0x5e3   : > { %v1168_v49 = vmul.f32 0.03125, %v1166_v48  ;;  %v3522_v48 = vld [vmem:[%s3758_s2 + $0x40] sm:$0xff] }
 0x5e5   : > { %v1169_v50 = vsub.f32 %v1161_v46, %v1168_v49  ;;  %v3509_v46 = vld [vmem:[%s3758_s2 + $0x60] sm:$0xff]  ;;  %v2683_v49 = vld [vmem:[%s3760_s4 + $0x11] ss:$0 sm:$0xff] }
 0x5e7   : > { %v1170_v51 = vmul.f32 %v1169_v50, %v1169_v50 }
 0x5e9   : > { %v1171_v52 = vsel %vm280_vm1, %v1170_v51, 0.0 }
 0x5ea   : > { %1172 = vadd.xlane.f32.xlu1 %v1171_v52 }
 0x673   : > { %v1173_v53 = vpop.xlane.xlu1 %1172 }
 0x674   : > { %v1174_v54 = vmul.f32 0.03125, %v1173_v53 }
 0x676   : > { %v1175_v55 = vadd.f32 1e-05, %v1174_v54  ;;  %v2673_v54 = vld [vmem:[%s3760_s4 + $0xa] ss:$0 sm:$0xff] }
 0x678   : > { %3073 = vrsqrt.f32 %v1175_v55 }
 0x685   : > { %v3074_v56 = vpop.eup %3073 }
 0x686   : > { %v1177_v6 = vmul.f32 %v3074_v56, %v1169_v50  ;;  %v2674_v56 = vld [vmem:[%s3760_s4 + $0xb] ss:$0 sm:$0xff] }
 0x688   : > { %v1182_v59 = vmul.f32 %v2664_v57, %v1177_v6 }
 0x68a   : > { %v1187_v61 = vadd.f32 %v2665_v58, %v1182_v59 }
 0x68c   : > { %v1193_v62 = vadd.f32 %v2666_v60, %v1187_v61  ;;  %v2681_v61 = vld [vmem:[%s3760_s4 + $0x10] ss:$0 sm:$0xff] }
 0x68e   : > { %v1196_v63 = vsel %vm280_vm1, %v1193_v62, 0.0 }
 0x68f   : > { %1197 = vadd.xlane.f32.xlu0 %v1196_v63 }
 0x718   : > { %v1198_v3 = vpop.xlane.xlu0 %1197 }
 0x719   : > { %v1199_v7 = vmul.f32 0.03125, %v1198_v3 }
 0x71b   : > { %v1200_v8 = vsub.f32 %v1193_v62, %v1199_v7 }
 0x71d   : > { %v1201_v9 = vmul.f32 %v1200_v8, %v1200_v8 }
 0x71f   : > { %v1202_v10 = vsel %vm280_vm1, %v1201_v9, 0.0 }
 0x720   : > { %1203 = vadd.xlane.f32.xlu0 %v1202_v10 }
 0x7a9   : > { %v1204_v4 = vpop.xlane.xlu0 %1203 }
 0x7aa   : > { %v1205_v18 = vmul.f32 0.03125, %v1204_v4 }
 0x7ac   : > { %v1206_v19 = vadd.f32 1e-05, %v1205_v18 }
 0x7ae   : > { %3075 = vrsqrt.f32 %v1206_v19 }
 0x7bb   : > { %v3076_v20 = vpop.eup %3075 }
 0x7bc   : > { %v1208_v22 = vmul.f32 %v3076_v20, %v1200_v8 }
 0x7be   : > { %v1213_v24 = vmul.f32 %v2667_v21, %v1208_v22 }
 0x7c0   : > { %v1218_v26 = vadd.f32 %v2668_v23, %v1213_v24 }
 0x7c2   : > { %2888 = vmatmul.mubr.msk.f32.vlgmr.msra.gmra.mxu1 %vm280_vm1, %v1218_v26 }
 0x7c3   : > { %2917 = vmatprep.mubr.msk.f32.mxu1 %vm3164_vm0, %v3163_v1  ;;  %2910 = vmatpush3.msra.mxu1 %v3503_v45 }
 0x7c4   : > { %2911 = vmatprep.subr.mxu1 %v3163_v1 }
 0x7c5   : > { %2912 = vmatpush3.msra.mxu1 %v3509_v46 }
 0x7c6   : > { %2913 = vmatprep.subr.mxu1 %v3163_v1 }
 0x7c7   : > { %2914 = vmatpush3.msra.mxu1 %v3515_v47 }
 0x7c8   : > { %2915 = vmatprep.subr.mxu1 %v3163_v1 }
 0x7c9   : > { %2916 = vmatpush3.msra.mxu1 %v3522_v48 }
 0x7ca   : > { %2920 = vmatprep.subr.mxu1 %v3163_v1 }
 0x882   : > { %v1299_v31 = vpop.f32.mrf.mxu1 }
 0x883   : > { %v1300_v32 = vadd.f32 %v2669_v30, %v1299_v31  ;;  %v2685_v31 = vld [vmem:[%s3760_s4 + $0x12] ss:$0 sm:$0xff] }
 0x884   : > { %v2889_v33 = vpop.f32.mrf.mxu1 }
 0x885   : > { %v1303_v34 = vmax.f32 %v1300_v32, 0.0 }
 0x887   : > { %2907 = vmatmul.mubr.msk.f32.vlgmr.msra.gmra.mxu0 %vm1317_vm6, %v1303_v34 }
 0x888   : > { %2932 = vmatprep.mubr.msk.f32.mxu0 %vm3164_vm0, %v3163_v1 }
 0x947   : > { %v1387_v36 = vpop.f32.mrf.mxu0 }
 0x948   : > { %v1388_v37 = vadd.f32 %v2671_v35, %v1387_v36 }
 0x949   : > { %v2908_v38 = vpop.f32.mrf.mxu0 }
 0x94a   : > { %v1391_v39 = vadd.f32 %v1388_v37, %v1218_v26 }
 0x94c   : > { %v1394_v40 = vsel %vm280_vm1, %v1391_v39, 0.0 }
 0x94d   : > { %1395 = vadd.xlane.f32.xlu1 %v1394_v40 }
 0x95e   : > { %1508 = vrot.lane.b32.xlu1 %v2683_v49, %s3165_s16 }
 0x9d6   : > { %v1396_v41 = vpop.xlane.xlu1 %1395 }
 0x9d7   : > { %v1397_v42 = vmul.f32 0.03125, %v1396_v41 }
 0x9d9   : > { %v1398_v5 = vsub.f32 %v1391_v39, %v1397_v42 }
 0x9da   : > { %v1509_v58 = vpop.permute.xlu1 %1508 }
 0x9db   : > { %v1399_v43 = vmul.f32 %v1398_v5, %v1398_v5 }
 0x9dd   : > { %v1400_v44 = vsel %vm280_vm1, %v1399_v43, 0.0 }
 0x9de   : > { %1401 = vadd.xlane.f32.xlu0 %v1400_v44 }
 0xa67   : > { %v1402_v50 = vpop.xlane.xlu0 %1401 }
 0xa68   : > { %v1403_v51 = vmul.f32 0.03125, %v1402_v50 }
 0xa6a   : > { %v1404_v52 = vadd.f32 1e-05, %v1403_v51 }
 0xa6c   : > { %3077 = vrsqrt.f32 %v1404_v52 }
 0xa79   : > { %v3078_v53 = vpop.eup %3077 }
 0xa7a   : > { %v1406_v55 = vmul.f32 %v3078_v53, %v1398_v5 }
 0xa7c   : > { %v1411_v57 = vmul.f32 %v2673_v54, %v1406_v55 }
 0xa7e   : > { %v3538_v6 = vadd.f32 %v2674_v56, %v1411_v57 }
 0xa80   : > { %2918 = vmatmul.mubr.msk.f32.vlgmr.msra.gmra.mxu1 %vm280_vm1, %v3538_v6 }
 0xa81   : > { %2922 = vmatprep.mubr.msk.f32.mxu1 %vm3164_vm0, %v3163_v1 }
 0xb40   : > { %v3544_v59 = vpop.f32.mrf.mxu1 }
 0xb41   : > { %v1511_v60 = vadd.f32 %v1509_v58, %v3544_v59  ;;  %v1501_v63 = vadd.f32 %v2681_v61, %v3544_v59 }
 0xb42   : > { %v2919_v62 = vpop.f32.mrf.mxu1 }
 0xb43   : > { %1692 = vrot.lane.b32.xlu1 %v1511_v60, %s3166_s12  ;;  %1523 = vrot.lane.b32.xlu0 %v1511_v60, %s3167_s13  ;;  %s2569_s12 = scalar_lea.hbm %s3762_s6, %s2734_s26 }
 0xb47   : > { %1859 = vrot.lane.b32.xlu0 %v1511_v60, %s3168_s14  ;;  %1690 = vrot.lane.b32.xlu1 %v1501_v63, %s3169_s17  ;;  %s3775_s14 = smov 64   ;;  %s3776_s17 = smov 48  }
 0xb4b   : > { %2026 = vrot.lane.b32.xlu0 %v1511_v60, %s3170_s18  ;;  %1857 = vrot.lane.b32.xlu1 %v1501_v63, %s3171_s19  ;;  %s3777_s18 = smov 40   ;;  %s3778_s19 = smov 56  }
 0xb4f   : > { %2024 = vrot.lane.b32.xlu1 %v1501_v63, %s3774_s15 }
 0xbb5   : > { %v1693_v3 = vpop.permute.xlu1 %1692  ;;  %v1524_v7 = vpop.permute.xlu0 %1523 }
 0xbb6   : > { %2921 = vmatpush3.xpose.msk.msra.mxu1 %vm383_vm2, %v1524_v7  ;;  %2931 = vmatpush3.xpose.msk.msra.mxu0 %vm383_vm2, %v1693_v3 }
 0xbb7   : > { %2940 = vmatprep.subr.mxu0 %v3163_v1  ;;  %2925 = vmatprep.subr.mxu1 %v3163_v1 }
 0xbb9   : > { %v1860_v8 = vpop.permute.xlu0 %1859  ;;  %v1691_v9 = vpop.permute.xlu1 %1690  ;;  %2923 = vmatmul.mubr.msk.f32.vlgmr.msra.gmra.mxu1 %vm383_vm2, %v1501_v63 }
 0xbba   : > { %2933 = vmatmul.mubr.msk.f32.vlgmr.msra.gmra.mxu0 %vm383_vm2, %v1691_v9  ;;  %2927 = vmatprep.mubr.msk.f32.mxu1 %vm3164_vm0, %v3163_v1 }
 0xbbb   : > { %2941 = vmatpush3.xpose.msk.msra.mxu0 %vm383_vm2, %v1860_v8  ;;  %2942 = vmatprep.mubr.msk.f32.mxu0 %vm3164_vm0, %v3163_v1 }
 0xbbc   : > { %2950 = vmatprep.subr.mxu0 %v3163_v1 }
 0xbbd   : > { %v2027_v10 = vpop.permute.xlu0 %2026  ;;  %v1858_v0 = vpop.permute.xlu1 %1857 }
 0xbbe   : > { %2943 = vmatmul.mubr.msk.f32.vlgmr.msra.gmra.mxu0 %vm383_vm2, %v1858_v0 }
 0xbbf   : > { %2951 = vmatpush3.xpose.msk.msra.mxu0 %vm383_vm2, %v2027_v10  ;;  %2952 = vmatprep.mubr.msk.f32.mxu0 %vm3164_vm0, %v3163_v1 }
 0xbc0   : > { %2960 = vmatprep.subr.mxu0 %v3163_v1 }
 0xbc1   : > { %v2025_v11 = vpop.permute.xlu1 %2024 }
 0xbc2   : > { %2953 = vmatmul.mubr.msk.f32.vlgmr.msra.gmra.mxu0 %vm383_vm2, %v2025_v11 }
 0xbc3   : > { %2968 = vmatprep.mubr.msk.f32.mxu0 %vm3164_vm0, %v3163_v1 }
 0xc79   : > { %v1596_v2 = vpop.f32.mrf.mxu1 }
 0xc7a   : > { %v1600_v12 = vmul.f32 0.35355338, %v1596_v2  ;;  %v1764_v13 = vpop.f32.mrf.mxu0 }
 0xc7b   : > { %v1768_v14 = vmul.f32 0.35355338, %v1764_v13  ;;  %v2924_v15 = vpop.f32.mrf.mxu1 }
 0xc7c   : > { %v2934_v16 = vpop.f32.mrf.mxu0  ;;  %v1601_v17 = vadd.f32 %v1600_v12, %v3355_v25 }
 0xc7d   : > { %v1769_v4 = vadd.f32 %v1768_v14, %v3355_v25 }
 0xc7e   : > { %v1931_v18 = vpop.f32.mrf.mxu0  ;;  %v1602_v19 = vsel %vm383_vm2, %v1601_v17, -inf }
 0xc7f   : > { %v1935_v20 = vmul.f32 0.35355338, %v1931_v18  ;;  %1603 = vmax.xlane.f32.xlu0 %v1602_v19  ;;  %v1770_v21 = vsel %vm383_vm2, %v1769_v4, -inf }
 0xc80   : > { %1771 = vmax.xlane.f32.xlu1 %v1770_v21  ;;  %v2944_v22 = vpop.f32.mrf.mxu0 }
 0xc81   : > { %v1936_v23 = vadd.f32 %v1935_v20, %v3355_v25 }
 0xc82   : > { %v2098_v24 = vpop.f32.mrf.mxu0 }
 0xc83   : > { %v2102_v26 = vmul.f32 0.35355338, %v2098_v24  ;;  %v1937_v27 = vsel %vm383_vm2, %v1936_v23, -inf }
 0xc84   : > { %v2954_v28 = vpop.f32.mrf.mxu0  ;;  %1938 = vmax.xlane.f32.xlu0 %v1937_v27 }
 0xc85   : > { %v2103_v29 = vadd.f32 %v2102_v26, %v3355_v25 }
 0xc87   : > { %v2104_v30 = vsel %vm383_vm2, %v2103_v29, -inf }
 0xc88   : > { %2105 = vmax.xlane.f32.xlu0 %v2104_v30 }
 0xc91   : > { %1518 = vrot.lane.b32.xlu1 %v2685_v31, %s3775_s14 }
 0xd08   : > { %v1604_v32 = vpop.xlane.xlu0 %1603 }
 0xd09   : > { %v1605_v33 = vsub.f32 %v1601_v17, %v1604_v32  ;;  %v1772_v34 = vpop.xlane.xlu1 %1771 }
 0xd0a   : > { %v1773_v35 = vsub.f32 %v1769_v4, %v1772_v34 }
 0xd0b   : > { %v1606_v36 = vmul.f32 1.442695, %v1605_v33 }
 0xd0c   : > { %v1774_v37 = vmul.f32 1.442695, %v1773_v35 }
 0xd0d   : > { %3079 = vpow2.f32 %v1606_v36  ;;  %v1519_v38 = vpop.permute.xlu1 %1518  ;;  %v1939_v39 = vpop.xlane.xlu0 %1938 }
 0xd0e   : > { %v1521_v25 = vadd.f32 %v1519_v38, %v3544_v59  ;;  %v1940_v40 = vsub.f32 %v1936_v23, %v1939_v39  ;;  %3081 = vpow2.f32 %v1774_v37 }
 0xd10   : > { %v1941_v41 = vmul.f32 1.442695, %v1940_v40  ;;  %1614 = vrot.lane.b32.xlu1 %v1521_v25, %s3775_s14  ;;  %v2703_v40 = vld [vmem:[%s3760_s4 + $0x16] ss:$0 sm:$0xff] }
 0xd11   : > { %v2106_v42 = vpop.xlane.xlu0 %2105 }
 0xd12   : > { %v2107_v5 = vsub.f32 %v2103_v29, %v2106_v42  ;;  %3083 = vpow2.f32 %v1941_v41  ;;  %v2704_v41 = vld [vmem:[%s3760_s4 + $0x17] ss:$0 sm:$0xff] }
 0xd14   : > { %v2108_v43 = vmul.f32 1.442695, %v2107_v5  ;;  %1948 = vrot.lane.b32.xlu1 %v1521_v25, %s3776_s17  ;;  %v2706_v5 = vld [vmem:[%s3760_s4 + $0x14] ss:$0 sm:$0xff]  ;;  %s3180_s17 = smov [#allocation2]  }
 0xd16   : > { %3085 = vpow2.f32 %v2108_v43 }
 0xd18   : > { %2115 = vrot.lane.b32.xlu1 %v1521_v25, %s3777_s18  ;;  %s251_s18 = sand.u32 1, %s3153_s22  }
 0xd19   : > { %s2558_s13 = scalar_lea.sflag [#allocation3], %s251_s18 }
 0xd1a   : > { %v3080_v44 = vpop.eup %3079 }
 0xd1b   : > { %v1608_v49 = vsel %vm383_vm2, %v3080_v44, 0.0  ;;  %v3082_v50 = vpop.eup %3081 }
 0xd1c   : > { %1609 = vadd.xlane.f32.xlu0 %v1608_v49  ;;  %2221 = vrot.lane.b32.xlu1 %v3503_v45, %s3165_s16  ;;  %v1776_v51 = vsel %vm383_vm2, %v3082_v50, 0.0 }
 0xd1f   : > { %v3084_v52 = vpop.eup %3083 }
 0xd20   : > { %1777 = vadd.xlane.f32.xlu0 %v1776_v51  ;;  %2219 = vrot.lane.b32.xlu1 %v3509_v46, %s3165_s16  ;;  %v1943_v53 = vsel %vm383_vm2, %v3084_v52, 0.0 }
 0xd23   : > { %v3086_v54 = vpop.eup %3085 }
 0xd24   : > { %1944 = vadd.xlane.f32.xlu0 %v1943_v53  ;;  %v2110_v55 = vsel %vm383_vm2, %v3086_v54, 0.0 }
 0xd28   : > { %2111 = vadd.xlane.f32.xlu0 %v2110_v55  ;;  %v2714_v55 = vld [vmem:[%s3758_s2 + $0x78] sm:$0xff] }
 0xd3e   : > { %1781 = vrot.lane.b32.xlu0 %v1521_v25, %s3778_s19  ;;  %s2643_s19 = sshll.u32 %s251_s18, 3 }
 0xd3f   : > { %s253_s20 = scalar_lea.vmem [#allocation2], %s2643_s19 }
 0xd40   : > { %s2571_s10 = sshll.u32 %s253_s20, 4  ;;  %s2572_s10 = int_to_ptr.vmem [resolvable:$true] %s2571_s10 }
 0xd41   : > { %s3101_s14 = scalar_lea.vmem %s2572_s10, 128 }
 0xd42   : > { %2217 = vrot.lane.b32.xlu0 %v3515_v47, %s3165_s16  ;;  %p3102_p11 = scmp.ne.s32.totalorder %s2572_s10, %s3101_s14 }
 0xd44   : > { %p3103_p12 = pnand %p3102_p11, %p3254_p5 }
 0xd46   : > { %p3104_p13 = pneg %p3103_p12 }
 0xd82   : > { %v1615_v45 = vpop.permute.xlu1 %1614 }
 0xd83   : > { %2926 = vmatpush3.msra.mxu1 %v1615_v45  ;;  %v2713_v45 = vld [vmem:[%s3758_s2 + $0x68] sm:$0xff] }
 0xd84   : > { %2935 = vmatprep.subr.mxu1 %v3163_v1 }
 0xd86   : > { %v1949_v47 = vpop.permute.xlu1 %1948 }
 0xd8a   : > { %v2116_v8 = vpop.permute.xlu1 %2115 }
 0xd8e   : > { %v2222_v0 = vpop.permute.xlu1 %2221 }
 0xd8f   : > { %2961 = vmatpush3.msra.mxu0 %v2222_v0 }
 0xd90   : > { %2962 = vmatprep.subr.mxu0 %v3163_v1 }
 0xd92   : > { %v2220_v11 = vpop.permute.xlu1 %2219 }
 0xd93   : > { %2963 = vmatpush3.msra.mxu0 %v2220_v11  ;;  %v2720_v11 = vld [vmem:[%s3759_s3 + $0x50] sm:$0xff] }
 0xd94   : > { %2964 = vmatprep.subr.mxu0 %v3163_v1 }
 0xda5   : > { %v1610_v56 = vpop.xlane.xlu0 %1609 }
 0xda6   : > { %3087 = vrcp.f32 %v1610_v56  ;;  %v2712_v56 = vld [vmem:[%s3758_s2 + $0x58] sm:$0xff] }
 0xda9   : > { %v1778_v57 = vpop.xlane.xlu0 %1777 }
 0xdaa   : > { %3089 = vrcp.f32 %v1778_v57  ;;  %v2711_v57 = vld [vmem:[%s3758_s2 + $0x48] sm:$0xff] }
 0xdad   : > { %v1945_v46 = vpop.xlane.xlu0 %1944 }
 0xdae   : > { %3091 = vrcp.f32 %v1945_v46  ;;  %v2725_v46 = vld [vmem:[%s3759_s3 + $0x78] sm:$0xff] }
 0xdb1   : > { %v2112_v58 = vpop.xlane.xlu0 %2111 }
 0xdb2   : > { %3093 = vrcp.f32 %v2112_v58  ;;  %v2724_v58 = vld [vmem:[%s3759_s3 + $0x70] sm:$0xff] }
 0xdb3   : > { %v3088_v59 = vpop.eup %3087 }
 0xdb4   : > { %v1612_v60 = vmul.f32 %v3088_v59, %v3080_v44  ;;  %v2723_v59 = vld [vmem:[%s3759_s3 + $0x68] sm:$0xff] }
 0xdb5   : > { %v1782_v61 = vpop.permute.xlu0 %1781 }
 0xdb6   : > { %2928 = vmatmul.mubr.msk.f32.vlgmr.msra.gmra.mxu1 %vm383_vm2, %v1612_v60  ;;  %v2722_v60 = vld [vmem:[%s3759_s3 + $0x60] sm:$0xff] }
 0xdb7   : > { %v3090_v62 = vpop.eup %3089  ;;  %2936 = vmatpush3.msra.mxu1 %v1782_v61  ;;  %2937 = vmatprep.mubr.msk.f32.mxu1 %vm3164_vm0, %v3163_v1  ;;  %v2721_v61 = vld [vmem:[%s3759_s3 + $0x58] sm:$0xff] }
 0xdb8   : > { %2945 = vmatprep.subr.mxu1 %v3163_v1  ;;  %v1780_v63 = vmul.f32 %v3090_v62, %v3082_v50 }
 0xdb9   : > { %v2218_v2 = vpop.permute.xlu0 %2217 }
 0xdba   : > { %2938 = vmatmul.mubr.msk.f32.vlgmr.msra.gmra.mxu1 %vm383_vm2, %v1780_v63  ;;  %2965 = vmatpush3.msra.mxu0 %v2218_v2  ;;  %v2719_v2 = vld [vmem:[%s3759_s3 + $0x48] sm:$0xff] }
 0xdbb   : > { %v3092_v3 = vpop.eup %3091  ;;  %2946 = vmatpush3.msra.mxu1 %v1949_v47  ;;  %2947 = vmatprep.mubr.msk.f32.mxu1 %vm3164_vm0, %v3163_v1 }
 0xdbc   : > { %2955 = vmatprep.subr.mxu1 %v3163_v1  ;;  %v1947_v7 = vmul.f32 %v3092_v3, %v3084_v52  ;;  %2966 = vmatprep.subr.mxu0 %v3163_v1 }
 0xdbe   : > { %2948 = vmatmul.mubr.msk.f32.vlgmr.msra.gmra.mxu1 %vm383_vm2, %v1947_v7  ;;  %v2709_v7 = vld [vmem:[%s3760_s4 + $0x18] ss:$0 sm:$0xff] }
 0xdbf   : > { %v3094_v9 = vpop.eup %3093  ;;  %2956 = vmatpush3.msra.mxu1 %v2116_v8  ;;  %2957 = vmatprep.mubr.msk.f32.mxu1 %vm3164_vm0, %v3163_v1 }
 0xdc0   : > { %v2114_v10 = vmul.f32 %v3094_v9, %v3086_v54  ;;  %2971 = vmatprep.subr.mxu1 %v3163_v1  ;;  %v2710_v9 = vld [vmem:[%s3760_s4 + $0x19] ss:$0 sm:$0xff] }
 0xdc2   : > { %2958 = vmatmul.mubr.msk.f32.vlgmr.msra.gmra.mxu1 %vm383_vm2, %v2114_v10 }
 0xdc3   : > { %2979 = vmatprep.mubr.msk.f32.mxu1 %vm3164_vm0, %v3163_v1  ;;  %2972 = vmatpush3.msra.mxu1 %v2714_v55 }
 0xdc4   : > { %2973 = vmatprep.subr.mxu1 %v3163_v1 }
 0xdc5   : > { %2974 = vmatpush3.msra.mxu1 %v2713_v45 }
 0xdc6   : > { %2975 = vmatprep.subr.mxu1 %v3163_v1 }
 0xdc7   : > { %2976 = vmatpush3.msra.mxu1 %v2712_v56 }
 0xdc8   : > { %2977 = vmatprep.subr.mxu1 %v3163_v1 }
 0xdc9   : > { %2978 = vmatpush3.msra.mxu1 %v2711_v57 }
 0xe76   : > { %v1686_v12 = vpop.f32.mrf.mxu1 }
 0xe78   : > { %v2929_v13 = vpop.f32.mrf.mxu1 }
 0xe79   : > { %v2716_v13 = vld [vmem:[%s3761_s5 + $0x1] ss:$0 sm:$0xff] }
 0xe7a   : > { %v1853_v14 = vpop.f32.mrf.mxu1 }
 0xe7b   : > { %2192 = vrot.lane.b32.xlu1 %v1853_v14, %s3779_s28  ;;  %s3105_s28 = sshll.u32 %s3180_s17, 4  ;;  %s3106_s28 = int_to_ptr.vmem [resolvable:$false] %s3105_s28 }
 0xe7c   : > { %v2939_v15 = vpop.f32.mrf.mxu1  ;;  %s3107_s25 = scalar_lea.vmem %s3106_s28, 256  ;;  %p3108_p0 = scmp.lt.s32.totalorder %s2572_s10, %s3106_s28 }
 0xe7d   : > { %p3109_p1 = scmp.lt.s32.totalorder %s3107_s25, %s3101_s14 }
 0xe7e   : > { %v2020_v16 = vpop.f32.mrf.mxu1 }
 0xe7f   : > { %2196 = vrot.lane.b32.xlu1 %v2020_v16, %s3780_s29  ;;  %p3110_p2 = por %p3109_p1, %p3108_p0 }
 0xe80   : > { %v2949_v17 = vpop.f32.mrf.mxu1 }
 0xe81   : > { %p3111_p3 = pnand %p3110_p2, %p3104_p13 }
 0xe82   : > { %v2187_v4 = vpop.f32.mrf.mxu1 }
 0xe83   : > { %2215 = vrot.lane.b32.xlu1 %v3522_v48, %s3165_s16  ;;  %2200 = vrot.lane.b32.xlu0 %v2187_v4, %s3781_s11  ;;  %v2699_v48 = vld [vmem:[%s3760_s4 + $0x13] ss:$0 sm:$0xff]  ;;  %v2727_v4 = vld [vmem:[%s3760_s4 + $0x15] ss:$0 sm:$0xff] }
 0xe84   : > { %v2959_v18 = vpop.f32.mrf.mxu1 }
 0xeed   : > { %v2193_v19 = vpop.permute.xlu1 %2192 }
 0xeee   : > { %v2203_v21 = vsel %vm383_vm2, %v1686_v12, %v2193_v19  ;;  %v2718_v12 = vld [vmem:[%s3759_s3 + $0x40] sm:$0xff] }
 0xef1   : > { %v2197_v20 = vpop.permute.xlu1 %2196 }
 0xef2   : > { %v2204_v22 = vsel %vm1063_vm4, %v2203_v21, %v2197_v20 }
 0xef5   : > { %v2216_v23 = vpop.permute.xlu1 %2215  ;;  %v2201_v24 = vpop.permute.xlu0 %2200 }
 0xef6   : > { %v2205_v26 = vsel %vm1065_vm5, %v2204_v22, %v2201_v24  ;;  %2967 = vmatpush3.msra.mxu0 %v2216_v23 }
 0xef7   : > { %2969 = vmatmul.mubr.msk.f32.vlgmr.msra.gmra.mxu0 %vm280_vm1, %v2205_v26  ;;  %2982 = vmatprep.subr.mxu0 %v3163_v1 }
 0xef8   : > { %2998 = vmatprep.mubr.msk.f32.mxu0 %vm3164_vm0, %v3163_v1  ;;  %2983 = vmatpush3.msra.mxu0 %v2725_v46 }
 0xef9   : > { %2984 = vmatprep.subr.mxu0 %v3163_v1 }
 0xefa   : > { %2985 = vmatpush3.msra.mxu0 %v2724_v58 }
 0xefb   : > { %2986 = vmatprep.subr.mxu0 %v3163_v1 }
 0xefc   : > { %2987 = vmatpush3.msra.mxu0 %v2723_v59 }
 0xefd   : > { %2988 = vmatprep.subr.mxu0 %v3163_v1 }
 0xefe   : > { %2989 = vmatpush3.msra.mxu0 %v2722_v60 }
 0xeff   : > { %2990 = vmatprep.subr.mxu0 %v3163_v1 }
 0xf00   : > { %2991 = vmatpush3.msra.mxu0 %v2721_v61 }
 0xf01   : > { %2992 = vmatprep.subr.mxu0 %v3163_v1 }
 0xf02   : > { %2993 = vmatpush3.msra.mxu0 %v2720_v11 }
 0xf03   : > { %2994 = vmatprep.subr.mxu0 %v3163_v1 }
 0xf04   : > { %2995 = vmatpush3.msra.mxu0 %v2719_v2 }
 0xf05   : > { %2996 = vmatprep.subr.mxu0 %v3163_v1 }
 0xf06   : > { %2997 = vmatpush3.msra.mxu0 %v2718_v12 }
 0xfb7   : > { %v2296_v27 = vpop.f32.mrf.mxu0 }
 0xfb8   : > { %v2297_v28 = vadd.f32 %v2699_v48, %v2296_v27 }
 0xfb9   : > { %v2970_v29 = vpop.f32.mrf.mxu0 }
 0xfba   : > { %v2300_v30 = vadd.f32 %v2297_v28, %v3538_v6 }
 0xfbc   : > { %v2303_v31 = vsel %vm280_vm1, %v2300_v30, 0.0 }
 0xfbd   : > { %2304 = vadd.xlane.f32.xlu0 %v2303_v31  ;;  %v2731_v31 = vld [vmem:[%s3760_s4 + $0x1a] ss:$0 sm:$0xff] }
0x1046   : > { %v2305_v32 = vpop.xlane.xlu0 %2304 }
0x1047   : > { %v2306_v33 = vmul.f32 0.03125, %v2305_v32 }
0x1049   : > { %v2307_v34 = vsub.f32 %v2300_v30, %v2306_v33  ;;  %v2732_v33 = vld [vmem:[%s3760_s4 + $0x1b] ss:$0 sm:$0xff] }
0x104b   : > { %v2308_v35 = vmul.f32 %v2307_v34, %v2307_v34 }
0x104d   : > { %v2309_v36 = vsel %vm280_vm1, %v2308_v35, 0.0 }
0x104e   : > { %2310 = vadd.xlane.f32.xlu1 %v2309_v36 }
0x10d7   : > { %v2311_v37 = vpop.xlane.xlu1 %2310 }
0x10d8   : > { %v2312_v38 = vmul.f32 0.03125, %v2311_v37 }
0x10da   : > { %v2313_v39 = vadd.f32 1e-05, %v2312_v38 }
0x10dc   : > { %3095 = vrsqrt.f32 %v2313_v39 }
0x10e9   : > { %v3096_v25 = vpop.eup %3095 }
0x10ea   : > { %v2315_v6 = vmul.f32 %v3096_v25, %v2307_v34 }
0x10ec   : > { %v2320_v42 = vmul.f32 %v2703_v40, %v2315_v6 }
0x10ee   : > { %v2325_v43 = vadd.f32 %v2704_v41, %v2320_v42 }
0x10f0   : > { %v2331_v44 = vadd.f32 %v2706_v5, %v2325_v43 }
0x10f2   : > { %v2334_v49 = vsel %vm280_vm1, %v2331_v44, 0.0 }
0x10f3   : > { %2335 = vadd.xlane.f32.xlu0 %v2334_v49 }
0x117c   : > { %v2336_v50 = vpop.xlane.xlu0 %2335 }
0x117d   : > { %v2337_v51 = vmul.f32 0.03125, %v2336_v50 }
0x117f   : > { %v2338_v52 = vsub.f32 %v2331_v44, %v2337_v51 }
0x1181   : > { %v2339_v53 = vmul.f32 %v2338_v52, %v2338_v52 }
0x1183   : > { %v2340_v54 = vsel %vm280_vm1, %v2339_v53, 0.0 }
0x1184   : > { %2341 = vadd.xlane.f32.xlu0 %v2340_v54 }
0x120d   : > { %v2342_v62 = vpop.xlane.xlu0 %2341 }
0x120e   : > { %v2343_v47 = vmul.f32 0.03125, %v2342_v62 }
0x1210   : > { %v2344_v63 = vadd.f32 1e-05, %v2343_v47 }
0x1212   : > { %3097 = vrsqrt.f32 %v2344_v63 }
0x121f   : > { %v3098_v3 = vpop.eup %3097 }
0x1220   : > { %v2346_v8 = vmul.f32 %v3098_v3, %v2338_v52 }
0x1222   : > { %v2351_v10 = vmul.f32 %v2709_v7, %v2346_v8 }
0x1224   : > { %v2356_v0 = vadd.f32 %v2710_v9, %v2351_v10 }
0x1226   : > { %2980 = vmatmul.mubr.msk.f32.vlgmr.msra.gmra.mxu1 %vm280_vm1, %v2356_v0 }
0x12e6   : > { %v2438_v14 = vpop.f32.mrf.mxu1 }
0x12e7   : > { %v2439_v15 = vadd.f32 %v2716_v13, %v2438_v14 }
0x12e8   : > { %v2981_v16 = vpop.f32.mrf.mxu1 }
0x12e9   : > { %v2442_v17 = vmax.f32 %v2439_v15, 0.0 }
0x12eb   : > { %2999 = vmatmul.mubr.msk.f32.vlgmr.msra.gmra.mxu0 %vm1317_vm6, %v2442_v17 }
0x13ab   : > { %v2526_v18 = vpop.f32.mrf.mxu0 }
0x13ac   : > { %v2527_v19 = vadd.f32 %v2727_v4, %v2526_v18 }
0x13ad   : > { %v3000_v20 = vpop.f32.mrf.mxu0 }
0x13ae   : > { %v2530_v1 = vadd.f32 %v2527_v19, %v2356_v0 }
0x13b0   : > { %v2533_v21 = vsel %vm280_vm1, %v2530_v1, 0.0 }
0x13b1   : > { %2534 = vadd.xlane.f32.xlu1 %v2533_v21 }
0x143a   : > { %v2535_v22 = vpop.xlane.xlu1 %2534 }
0x143b   : > { %v2536_v23 = vmul.f32 0.03125, %v2535_v22 }
0x143d   : > { %v2537_v24 = vsub.f32 %v2530_v1, %v2536_v23 }
0x143f   : > { %v2538_v26 = vmul.f32 %v2537_v24, %v2537_v24 }
0x1441   : > { %v2539_v48 = vsel %vm280_vm1, %v2538_v26, 0.0 }
0x1442   : > { %2540 = vadd.xlane.f32.xlu0 %v2539_v48 }
0x14cb   : > { %v2541_v27 = vpop.xlane.xlu0 %2540 }
0x14cc   : > { %v2542_v28 = vmul.f32 0.03125, %v2541_v27 }
0x14ce   : > { %v2543_v29 = vadd.f32 1e-05, %v2542_v28 }
0x14d0   : > { %3099 = vrsqrt.f32 %v2543_v29 }
0x14dd   : > { %v3100_v30 = vpop.eup %3099 }
0x14de   : > { %v2545_v32 = vmul.f32 %v3100_v30, %v2537_v24 }
0x14e0   : > { %v2550_v34 = vmul.f32 %v2731_v31, %v2545_v32 }
0x14e2   : > { %v2555_v35 = vadd.f32 %v2732_v33, %v2550_v34 }
0x14e4   : > { %2556 = vst.msk [vmem:[%s253_s20] sm:$0xff] %vm280_vm1, %v2555_v35 }
0x14e5   : > { %3114 = shalt.err (!%p3111_p3)
}
0x14e6   : > { %s3115_s19 = scalar_lea.hbm %s2569_s12, 128  ;;  %s3119_s11 = scalar_lea.hbm %s3762_s6, 256 }
0x14e7   : > { %p3116_p4 = scmp.ne.s32.totalorder %s2569_s12, %s3115_s19  ;;  %p3120_p9 = scmp.lt.s32.totalorder %s2569_s12, %s3762_s6 }
0x14e8   : > { %p3121_p10 = scmp.lt.s32.totalorder %s3119_s11, %s3115_s19 }
0x14e9   : > { %p3117_p7 = pnand %p3116_p4, %p3254_p5 }
0x14ea   : > { %p3122_p11 = por %p3121_p10, %p3120_p9 }
0x14eb   : > { %p3118_p8 = pneg %p3117_p7 }
0x14ed   : > { %p3123_p12 = pnand %p3122_p11, %p3118_p8 }
0x14ef   : > { %3126 = shalt.err (!%p3123_p12)
}
0x14f0   : > { %3001 = dma.vmem_to_hbm [thread:$0]  (%p3254_p5), %s2572_s10, 128, %s2569_s12, %s2558_s13  }
0x14f1 PF: > { %p3007_p13 = scmp.ge.s32.totalorder %s3161_s24, 2  ;;  %s2583_s20 = sand.u32 1, %s3149_s21  }
0x14f2   : > { %s2584_s9 = scalar_lea.sflag [#allocation3], %s2583_s20 }
0x14f3   : > { %p3004_p0 = pnand %p3007_p13, %p3258_p6 }
0x14f5   : > { %p3005_p1 = pneg %p3004_p0 }
0x14f7   : > { %3144 = dma.done.wait (%p3005_p1), %s2584_s9, 128  }
0x14f8   : > { %3146 = vsyncadd (%p3005_p1), %s2584_s9, 4294967168  ;;  %p16_p2 = scmp.ge.s32.totalorder %s3241_s27, 4   ;;  %s3782_s21 = smov %s3153_s22 }
0x14f9   : > { %s3783_s22 = smov %s3157_s23  ;;  %s3784_s23 = smov %s3252_s30 }
0x14fa   : > { %s3785_s24 = smov %s3241_s27  ;;  %18 = sbr.rel (!%p16_p2) target bundleno = 3 (0x3), region = 86 }
0x14ff   :  { %2589 = vsyncpa [#allocation3], 1 }
0x1500   :  { %2591 = vsyncpa [#allocation3 + $0x1], 1 }

</bundles_post_ra>
